<compile_context>
chip_gen: v7x
topology: tpu7x:2x2x1
jax: 0.10.0
libtpu: 0.0.40
codegen_flags: <defaults>
</compile_context>

<pallas_src>
import functools

import numpy as np
import jax
import jax.numpy as jnp
from jax import lax
from jax.experimental import pallas as pl
from jax.experimental.pallas import tpu as pltpu

_BIG = 1e10


def _local_grouper_kernel(xp_ref, xyzt_ref,                    # inputs  (per batch)
                          newxyz_ref, aug_ref, gpts_ref,       # outputs (per batch)
                          npts_ref, d_ref, s1_ref, s2_ref,     # VMEM scratch
                          *, groups, kneighbors, feat_dim, chunk,
                          norm_augmented, concat_anchor):
    G, K, D, Kc = groups, kneighbors, feat_dim, chunk
    n_chunks = K // Kc
    f32 = jnp.float32

    xt = xyzt_ref[...]                                   # [3, N] (xyz, lane-major)
    N = xt.shape[-1]
    x0, x1, x2 = xt[0:1, :], xt[1:2, :], xt[2:3, :]
    xsq = x0 * x0 + x1 * x1 + x2 * x2                    # [1, N] hoisted |x|^2
    iota_1n = lax.broadcasted_iota(jnp.int32, (1, N), 1)
    iota_gn = lax.broadcasted_iota(jnp.int32, (G, N), 1)

    # ---------------- furthest point sampling (seed = point 0), VPU/scalar only ---------
    def fps_body(i, carry):
        mind, far = carry                                 # [1,N] f32, scalar i32
        row = xp_ref[pl.ds(far, 1), :]                    # [1, D+3] dynamic row load
        if concat_anchor:
            npts_ref[pl.ds(i, 1), :] = row[:, :D]         # anchor features
        newxyz_ref[pl.ds(i, 1), :] = row[:, D:D + 3]      # anchor coordinates
        cx = row[:, D:D + 1]
        cy = row[:, D + 1:D + 2]
        cz = row[:, D + 2:D + 3]
        # dist = |x|^2 - 2 x.c + |c|^2 : no masked lane-reduce, no [3,N] select per step.
        dist = xsq - 2.0 * (x0 * cx + x1 * cy + x2 * cz) + (cx * cx + cy * cy + cz * cz)
        mind = jnp.minimum(mind, dist)
        maxv = jnp.max(mind, axis=1, keepdims=True)       # [1, 1]
        far_next = jnp.min(jnp.where(mind == maxv, iota_1n, N)).astype(jnp.int32)
        return mind, far_next

    lax.fori_loop(0, G, fps_body,
                  (jnp.full((1, N), _BIG, f32), jnp.int32(0)))

    # ---------------- kNN distance matrix (built once, VPU broadcasts) -------------------
    new_xyz = newxyz_ref[...]                             # [G, 3]
    nx, ny, nz = new_xyz[:, 0:1], new_xyz[:, 1:2], new_xyz[:, 2:3]
    d_ref[...] = xsq - 2.0 * (nx * x0 + ny * x1 + nz * x2) + (nx * nx + ny * ny + nz * nz)

    if norm_augmented:
        s1_ref[...] = jnp.zeros_like(s1_ref)
        s2_ref[...] = jnp.zeros_like(s2_ref)

    # ---------------- chunked kNN selection + batched gather -----------------------------
    def chunk_body(c, _):
        k0 = c * Kc
        d = d_ref[...]                                    # one load per chunk
        idxs = []
        for _kc in range(Kc):                             # Kc sequential argmin picks
            mv = jnp.min(d, axis=-1, keepdims=True)                               # [G,1]
            idx = jnp.min(jnp.where(d == mv, iota_gn, N), axis=-1, keepdims=True)  # [G,1]
            idxs.append(idx)
            d = jnp.where(iota_gn == idx, _BIG, d)        # exclusion, no mul-add
        d_ref[...] = d                                    # one store per chunk

        # one [Kc*G, N] x [N, D+3] gather matmul for the whole chunk (kc-major rows)
        idx_flat = jnp.concatenate(idxs, axis=0)          # [Kc*G, 1]
        lhs = (lax.broadcasted_iota(jnp.int32, (Kc * G, N), 1) == idx_flat).astype(f32)
        gout = jnp.dot(lhs, xp_ref[...], preferred_element_type=f32)   # [Kc*G, D+3]

        feat_slabs = []
        aug_pieces = []
        for kc in range(Kc):
            gk = gout[kc * G:(kc + 1) * G, :]             # [G, D+3] static row slice
            gx = gk[:, D:D + 3]                           # grouped xyz
            vk = gx - new_xyz
            ak = jnp.sqrt(vk[:, 0:1] * vk[:, 0:1] + vk[:, 1:2] * vk[:, 1:2]
                          + vk[:, 2:3] * vk[:, 2:3])      # [G, 1]
            aug_pieces.append(jnp.concatenate([ak, vk, new_xyz, gx], axis=-1))  # [G,10]
            feat_slabs.append(gk[:, None, :D])            # [G, 1, D]

        # batched feature store (anchor half is filled once, after the loop)
        gpts_ref[:, pl.ds(k0, Kc), :D] = jnp.concatenate(feat_slabs, axis=1)    # [G,Kc,D]
        # lane-dense aug slab for this chunk
        aug_ref[c] = jnp.concatenate(aug_pieces, axis=-1)                       # [G,Kc*10]

        if norm_augmented:
            ps = aug_pieces[0]
            pq = aug_pieces[0] * aug_pieces[0]
            for p in aug_pieces[1:]:
                ps = ps + p
                pq = pq + p * p
            s1_ref[...] += ps                             # running sum over K
            s2_ref[...] += pq                             # running sum of squares over K
        return 0

    lax.fori_loop(0, n_chunks, chunk_body, 0)

    # ---------------- anchor-feature half of grouped_points, written once ----------------
    if concat_anchor:
        gpts_ref[:, :, pl.ds(D, D)] = jnp.broadcast_to(
            npts_ref[...][:, None, :], (G, K, D))

    # ---------------- per-group normalization over K (in place, unbiased, eps=1e-8) ------
    if norm_augmented:
        s1 = s1_ref[...]
        mean = s1 * (1.0 / K)                             # [G, 10]
        varsum = jnp.maximum(s2_ref[...] - s1 * mean, 0.0)
        std = jnp.sqrt(varsum / (K - 1))                  # K=1 -> nan (matches torch)
        mean_t = jnp.tile(mean, (1, Kc))[None]            # [1, G, Kc*10]
        std_t = jnp.tile(std, (1, Kc))[None]
        aug_ref[...] = (aug_ref[...] - mean_t) / (std_t + 1e-8)


# ------------------------------ wrapper / tiling helpers --------------------------------
def _pick_chunk(K, G, N, onehot_budget_bytes=8 << 20):
    """Largest divisor of K whose [Kc*G, N] f32 one-hot temp stays under budget."""
    kc = max(1, min(K, onehot_budget_bytes // max(1, 4 * G * N)))
    while K % kc:
        kc -= 1
    return kc


def _round_up(v, m):
    return -(-v // m) * m


def _padded_bytes(shape):
    s = list(shape)
    s[-1] = _round_up(s[-1], 128)
    if len(s) >= 2:
        s[-2] = _round_up(s[-2], 8)
    n = 1
    for v in s:
        n *= v
    return 4 * n


def _vmem_bytes(N, D, G, K, Kc, out_d):
    nc = K // Kc
    inputs = 2 * (_padded_bytes((N, D + 3)) + _padded_bytes((3, N)))
    outputs = 2 * (_padded_bytes((G, 3)) + _padded_bytes((nc, G, Kc * 10))
                   + _padded_bytes((G, K, out_d)))
    scratch = (_padded_bytes((G, D)) + _padded_bytes((G, N)) + 2 * _padded_bytes((G, 10)))
    temps = (_padded_bytes((Kc * G, N)) + _padded_bytes((Kc * G, D + 3))
             + 2 * _padded_bytes((G, N)))
    return inputs + outputs + scratch + temps


def _vmem_limit_bytes(need):
    cap = 64 * 2**20                                      # conservative (v7x per-core)
    try:
        cap = int(pltpu.get_tpu_info().vmem_capacity_bytes)
    except Exception:
        pass
    cap = (cap * 3) // 4                                  # leave headroom below physical
    return int(min(cap, max(32 * 2**20, int(need * 1.25))))


def local_grouper(xyz, points, groups, kneighbors,
                  norm_augmented=True, concat_anchor=True):
    """xyz [B,N,3], points [B,N,D] -> new_xyz [B,G,3], aug [B,G,K,10], fea [B,G,K,(2)D]."""
    B, N, _ = xyz.shape
    D = points.shape[-1]
    G, K = groups, kneighbors
    out_d = 2 * D if concat_anchor else D
    Kc = _pick_chunk(K, G, N)
    nc = K // Kc

    xyz = xyz.astype(jnp.float32)
    points = points.astype(jnp.float32)
    # features first so the gathered feature slice sits at lane offset 0 in the kernel.
    xp = jnp.concatenate([points, xyz], axis=-1)          # [B, N, D+3]
    xyz_t = jnp.transpose(xyz, (0, 2, 1))                 # [B, 3, N] (tiny glue transpose)

    kernel = functools.partial(
        _local_grouper_kernel, groups=G, kneighbors=K, feat_dim=D, chunk=Kc,
        norm_augmented=norm_augmented, concat_anchor=concat_anchor)

    vmem_limit = _vmem_limit_bytes(_vmem_bytes(N, D, G, K, Kc, out_d))

    new_xyz, aug_c, grouped = pl.pallas_call(
        kernel,
        out_shape=(
            jax.ShapeDtypeStruct((B, G, 3), jnp.float32),
            jax.ShapeDtypeStruct((B, nc, G, Kc * 10), jnp.float32),
            jax.ShapeDtypeStruct((B, G, K, out_d), jnp.float32),
        ),
        grid_spec=pltpu.PrefetchScalarGridSpec(
            num_scalar_prefetch=0,
            grid=(B,),
            in_specs=[
                pl.BlockSpec((None, N, D + 3), lambda b: (b, 0, 0)),
                pl.BlockSpec((None, 3, N), lambda b: (b, 0, 0)),
            ],
            out_specs=[
                pl.BlockSpec((None, G, 3), lambda b: (b, 0, 0)),
                pl.BlockSpec((None, nc, G, Kc * 10), lambda b: (b, 0, 0, 0)),
                pl.BlockSpec((None, G, K, out_d), lambda b: (b, 0, 0, 0)),
            ],
            scratch_shapes=[
                pltpu.VMEM((G, D), jnp.float32),      # anchor features (new_points)
                pltpu.VMEM((G, N), jnp.float32),      # kNN distance matrix
                pltpu.VMEM((G, 10), jnp.float32),     # sum of aug over K
                pltpu.VMEM((G, 10), jnp.float32),     # sum of aug^2 over K
            ],
        ),
        compiler_params=pltpu.CompilerParams(
            dimension_semantics=("parallel",),
            vmem_limit_bytes=vmem_limit),
    )(xp, xyz_t)

    # grouped_points is emitted directly in module layout [B, G, K, (2)D].
    # aug is chunk-major and lane-dense: [B, nc, G, Kc*10] -> [B, G, K, 10] (small).
    aug = aug_c.reshape(B, nc, G, Kc, 10).transpose(0, 2, 1, 3, 4).reshape(B, G, K, 10)
    return new_xyz, aug, grouped


# ---------------------------- pure-JAX reference ----------------------------------------
def local_grouper_reference(xyz, points, groups, kneighbors,
                            norm_augmented=True, concat_anchor=True):
    B, N, _ = xyz.shape
    D = points.shape[-1]
    G, K = groups, kneighbors

    def one(x, p):
        def fps_body(i, st):
            mind, far, idxs = st
            idxs = idxs.at[i].set(far)
            c = x[far]
            dd = jnp.sum((x - c) ** 2, axis=-1)
            mind = jnp.minimum(mind, dd)
            far = jnp.argmax(mind).astype(jnp.int32)
            return mind, far, idxs

        st0 = (jnp.full((N,), _BIG, jnp.float32), jnp.int32(0),
               jnp.zeros((G,), jnp.int32))
        _, _, fps_idx = lax.fori_loop(0, G, fps_body, st0)
        new_xyz = x[fps_idx]
        new_pts = p[fps_idx]

        d = jnp.sum((new_xyz[:, None, :] - x[None, :, :]) ** 2, axis=-1)   # [G,N]
        cols = []
        col_iota = jnp.arange(N)[None, :]
        for _ in range(K):
            j = jnp.argmin(d, axis=-1)
            cols.append(j)
            d = jnp.where(col_iota == j[:, None], _BIG, d)
        knn = jnp.stack(cols, axis=-1)                                     # [G,K]
        g_xyz = x[knn]
        g_pts = p[knn]

        val = g_xyz - new_xyz[:, None, :]
        absd = jnp.sqrt(jnp.sum(val * val, axis=-1, keepdims=True))
        anchor = jnp.broadcast_to(new_xyz[:, None, :], (G, K, 3))
        aug = jnp.concatenate([absd, val, anchor, g_xyz], axis=-1)
        if norm_augmented:
            mean = aug.mean(axis=1, keepdims=True)
            std = jnp.sqrt(jnp.sum((aug - mean) ** 2, axis=1, keepdims=True) / (K - 1))
            aug = (aug - mean) / (std + 1e-8)
        if concat_anchor:
            g_pts = jnp.concatenate(
                [g_pts, jnp.broadcast_to(new_pts[:, None, :], (G, K, D))], axis=-1)
        return new_xyz, aug, g_pts

    return jax.vmap(one)(xyz, points)


if __name__ == "__main__":
    key = jax.random.PRNGKey(0)
    kx, kp = jax.random.split(key)

    B, N, D = 2, 64, 16       # batch, points, feature channels
    G, K = 8, 8               # groups, k-neighbors

    xyz = jax.random.uniform(kx, (B, N, 3), dtype=jnp.float32)
    # Quantize coordinates to multiples of 1/256 so every squared distance is exact in
    # f32 for both the kernel and the reference -> identical FPS/kNN argmax decisions
    # regardless of the (algebraically equivalent) distance formulation.
    xyz = jnp.round(xyz * 256.0) / 256.0
    points = jax.random.normal(kp, (B, N, D), dtype=jnp.float32)

    fn = jax.jit(functools.partial(local_grouper, groups=G, kneighbors=K))
    new_xyz, aug, grouped = fn(xyz, points)
    jax.block_until_ready((new_xyz, aug, grouped))

    assert new_xyz.shape == (B, G, 3)
    assert aug.shape == (B, G, K, 10)
    assert grouped.shape == (B, G, K, 2 * D)

    r_new, r_aug, r_gp = jax.jit(
        functools.partial(local_grouper_reference, groups=G, kneighbors=K))(xyz, points)
    np.testing.assert_allclose(np.asarray(new_xyz), np.asarray(r_new), rtol=5e-3, atol=5e-3)
    np.testing.assert_allclose(np.asarray(aug), np.asarray(r_aug), rtol=5e-3, atol=5e-3)
    np.testing.assert_allclose(np.asarray(grouped), np.asarray(r_gp), rtol=5e-3, atol=5e-3)

    print("KERNEL_OK")
</pallas_src>

<mosaic_0001>
module attributes {stable_mosaic.version = 11 : i64} {
  func.func @_local_grouper_kernel(%arg0: i32, %arg1: memref<1x64x19xf32, #tpu.memory_space<vmem>>, %arg2: memref<1x3x64xf32, #tpu.memory_space<vmem>>, %arg3: memref<1x8x3xf32, #tpu.memory_space<vmem>>, %arg4: memref<1x1x8x80xf32, #tpu.memory_space<vmem>>, %arg5: memref<1x8x8x32xf32, #tpu.memory_space<vmem>>, %arg6: memref<8x16xf32, #tpu.memory_space<vmem>>, %arg7: memref<8x64xf32, #tpu.memory_space<vmem>>, %arg8: memref<8x10xf32, #tpu.memory_space<vmem>>, %arg9: memref<8x10xf32, #tpu.memory_space<vmem>>) attributes {dimension_semantics = [#tpu.dimension_semantics<parallel>], iteration_bounds = array<i64: 2>, scalar_prefetch = 0 : i64, scratch_operands = 4 : i64, tpu.core_type = #tpu.core_type<tc>, window_params = [{transform_indices = @transform_0, window_bounds = array<i64: 1, 64, 19>}, {transform_indices = @transform_1, window_bounds = array<i64: 1, 3, 64>}, {transform_indices = @transform_2, window_bounds = array<i64: 1, 8, 3>}, {transform_indices = @transform_3, window_bounds = array<i64: 1, 1, 8, 80>}, {transform_indices = @transform_4, window_bounds = array<i64: 1, 8, 8, 32>}]} {
    %c0 = arith.constant 0 : index
    %c0_0 = arith.constant 0 : index
    %c0_1 = arith.constant 0 : index
    %0 = vector.load %arg2[%c0, %c0_0, %c0_1] : memref<1x3x64xf32, #tpu.memory_space<vmem>>, vector<1x3x64xf32>
    %1 = vector.shape_cast %0 : vector<1x3x64xf32> to vector<3x64xf32>
    %2 = vector.extract_strided_slice %1 {offsets = [0, 0], sizes = [1, 64], strides = [1, 1]} : vector<3x64xf32> to vector<1x64xf32>
    %3 = vector.extract_strided_slice %1 {offsets = [1, 0], sizes = [1, 64], strides = [1, 1]} : vector<3x64xf32> to vector<1x64xf32>
    %4 = vector.extract_strided_slice %1 {offsets = [2, 0], sizes = [1, 64], strides = [1, 1]} : vector<3x64xf32> to vector<1x64xf32>
    %5 = arith.mulf %2, %2 : vector<1x64xf32>
    %6 = arith.mulf %3, %3 : vector<1x64xf32>
    %7 = arith.addf %5, %6 : vector<1x64xf32>
    %8 = arith.mulf %4, %4 : vector<1x64xf32>
    %9 = arith.addf %7, %8 : vector<1x64xf32>
    %10 = tpu.iota {dimensions = array<i32: 1>} : vector<1x64xi32>
    %11 = tpu.iota {dimensions = array<i32: 1>} : vector<8x64xi32>
    %cst = arith.constant 1.000000e+10 : f32
    %12 = vector.broadcast %cst : f32 to vector<1x64xf32>
    %c0_i32 = arith.constant 0 : i32
    %c0_i32_2 = arith.constant 0 : i32
    %c8_i32 = arith.constant 8 : i32
    %13 = arith.addi %c0_i32_2, %c8_i32 : i32
    %c1_i32 = arith.constant 1 : i32
    %14:2 = scf.for %arg10 = %c0_i32_2 to %13 step %c1_i32 iter_args(%arg11 = %12, %arg12 = %c0_i32) -> (vector<1x64xf32>, i32)  : i32 {
      %c0_93 = arith.constant 0 : index
      %368 = arith.index_cast %arg12 : i32 to index
      %c0_94 = arith.constant 0 : index
      %369 = vector.load %arg1[%c0_93, %368, %c0_94] : memref<1x64x19xf32, #tpu.memory_space<vmem>>, vector<1x1x19xf32>
      %370 = vector.shape_cast %369 : vector<1x1x19xf32> to vector<1x19xf32>
      %371 = vector.extract_strided_slice %370 {offsets = [0, 0], sizes = [1, 16], strides = [1, 1]} : vector<1x19xf32> to vector<1x16xf32>
      %372 = arith.index_cast %arg10 : i32 to index
      %c0_95 = arith.constant 0 : index
      %373 = vector.load %arg6[%372, %c0_95] : memref<8x16xf32, #tpu.memory_space<vmem>>, vector<1x16xf32>
      tpu.vector_store %arg6[%372, %c0_95], %371 {strides = array<i32>} : memref<8x16xf32, #tpu.memory_space<vmem>>, vector<1x16xf32>,
      %374 = vector.extract_strided_slice %370 {offsets = [0, 16], sizes = [1, 3], strides = [1, 1]} : vector<1x19xf32> to vector<1x3xf32>
      %c0_96 = arith.constant 0 : index
      %375 = arith.index_cast %arg10 : i32 to index
      %c0_97 = arith.constant 0 : index
      %376 = vector.load %arg3[%c0_96, %375, %c0_97] : memref<1x8x3xf32, #tpu.memory_space<vmem>>, vector<1x1x3xf32>
      %377 = vector.shape_cast %376 : vector<1x1x3xf32> to vector<1x3xf32>
      %378 = vector.shape_cast %374 : vector<1x3xf32> to vector<1x1x3xf32>
      tpu.vector_store %arg3[%c0_96, %375, %c0_97], %378 {strides = array<i32>} : memref<1x8x3xf32, #tpu.memory_space<vmem>>, vector<1x1x3xf32>,
      %379 = vector.extract_strided_slice %370 {offsets = [0, 16], sizes = [1, 1], strides = [1, 1]} : vector<1x19xf32> to vector<1x1xf32>
      %380 = vector.extract_strided_slice %370 {offsets = [0, 17], sizes = [1, 1], strides = [1, 1]} : vector<1x19xf32> to vector<1x1xf32>
      %381 = vector.extract_strided_slice %370 {offsets = [0, 18], sizes = [1, 1], strides = [1, 1]} : vector<1x19xf32> to vector<1x1xf32>
      %382 = vector.broadcast %379 : vector<1x1xf32> to vector<1x64xf32>
      %383 = arith.mulf %2, %382 : vector<1x64xf32>
      %384 = vector.broadcast %380 : vector<1x1xf32> to vector<1x64xf32>
      %385 = arith.mulf %3, %384 : vector<1x64xf32>
      %386 = arith.addf %383, %385 : vector<1x64xf32>
      %387 = vector.broadcast %381 : vector<1x1xf32> to vector<1x64xf32>
      %388 = arith.mulf %4, %387 : vector<1x64xf32>
      %389 = arith.addf %386, %388 : vector<1x64xf32>
      %cst_98 = arith.constant 2.000000e+00 : f32
      %390 = vector.broadcast %cst_98 : f32 to vector<1x64xf32>
      %391 = arith.mulf %390, %389 : vector<1x64xf32>
      %392 = arith.subf %9, %391 : vector<1x64xf32>
      %393 = arith.mulf %379, %379 : vector<1x1xf32>
      %394 = arith.mulf %380, %380 : vector<1x1xf32>
      %395 = arith.addf %393, %394 : vector<1x1xf32>
      %396 = arith.mulf %381, %381 : vector<1x1xf32>
      %397 = arith.addf %395, %396 : vector<1x1xf32>
      %398 = vector.broadcast %397 : vector<1x1xf32> to vector<1x64xf32>
      %399 = arith.addf %392, %398 : vector<1x64xf32>
      %400 = arith.minimumf %arg11, %399 : vector<1x64xf32>
      %cst_99 = arith.constant dense<0xFF800000> : vector<1xf32>
      %401 = vector.multi_reduction <maximumf>, %400, %cst_99 [1] : vector<1x64xf32> to vector<1xf32>
      %402 = vector.shape_cast %401 : vector<1xf32> to vector<1x1xf32>
      %403 = vector.broadcast %402 : vector<1x1xf32> to vector<1x64xf32>
      %404 = arith.cmpf oeq, %400, %403 : vector<1x64xf32>
      %c64_i32_100 = arith.constant 64 : i32
      %405 = vector.broadcast %c64_i32_100 : i32 to vector<1x64xi32>
      %406 = arith.select %404, %10, %405 : vector<1x64xi1>, vector<1x64xi32>
      %407 = vector.shape_cast %406 : vector<1x64xi32> to vector<1x1x64xi32>
      %cst_101 = arith.constant dense<2147483647> : vector<1xi32>
      %408 = vector.multi_reduction <minsi>, %407, %cst_101 [1, 2] : vector<1x1x64xi32> to vector<1xi32>
      %409 = vector.shape_cast %408 : vector<1xi32> to vector<1x1x1xi32>
      %410 = vector.extract %409[0, 0, 0] : i32 from vector<1x1x1xi32>
      scf.yield %400, %410 : vector<1x64xf32>, i32
    }
    %c8_i32_3 = arith.constant 8 : i32
    %c0_4 = arith.constant 0 : index
    %c0_5 = arith.constant 0 : index
    %c0_6 = arith.constant 0 : index
    %15 = vector.load %arg3[%c0_4, %c0_5, %c0_6] : memref<1x8x3xf32, #tpu.memory_space<vmem>>, vector<1x8x3xf32>
    %16 = vector.shape_cast %15 : vector<1x8x3xf32> to vector<8x3xf32>
    %17 = vector.extract_strided_slice %16 {offsets = [0, 0], sizes = [8, 1], strides = [1, 1]} : vector<8x3xf32> to vector<8x1xf32>
    %18 = vector.extract_strided_slice %16 {offsets = [0, 1], sizes = [8, 1], strides = [1, 1]} : vector<8x3xf32> to vector<8x1xf32>
    %19 = vector.extract_strided_slice %16 {offsets = [0, 2], sizes = [8, 1], strides = [1, 1]} : vector<8x3xf32> to vector<8x1xf32>
    %20 = vector.broadcast %17 : vector<8x1xf32> to vector<8x64xf32>
    %21 = vector.broadcast %2 : vector<1x64xf32> to vector<8x64xf32>
    %22 = arith.mulf %20, %21 : vector<8x64xf32>
    %23 = vector.broadcast %18 : vector<8x1xf32> to vector<8x64xf32>
    %24 = vector.broadcast %3 : vector<1x64xf32> to vector<8x64xf32>
    %25 = arith.mulf %23, %24 : vector<8x64xf32>
    %26 = arith.addf %22, %25 : vector<8x64xf32>
    %27 = vector.broadcast %19 : vector<8x1xf32> to vector<8x64xf32>
    %28 = vector.broadcast %4 : vector<1x64xf32> to vector<8x64xf32>
    %29 = arith.mulf %27, %28 : vector<8x64xf32>
    %30 = arith.addf %26, %29 : vector<8x64xf32>
    %cst_7 = arith.constant 2.000000e+00 : f32
    %31 = vector.broadcast %cst_7 : f32 to vector<8x64xf32>
    %32 = arith.mulf %31, %30 : vector<8x64xf32>
    %33 = vector.broadcast %9 : vector<1x64xf32> to vector<8x64xf32>
    %34 = arith.subf %33, %32 : vector<8x64xf32>
    %35 = arith.mulf %17, %17 : vector<8x1xf32>
    %36 = arith.mulf %18, %18 : vector<8x1xf32>
    %37 = arith.addf %35, %36 : vector<8x1xf32>
    %38 = arith.mulf %19, %19 : vector<8x1xf32>
    %39 = arith.addf %37, %38 : vector<8x1xf32>
    %40 = vector.broadcast %39 : vector<8x1xf32> to vector<8x64xf32>
    %41 = arith.addf %34, %40 : vector<8x64xf32>
    %c0_8 = arith.constant 0 : index
    %c0_9 = arith.constant 0 : index
    %42 = vector.load %arg7[%c0_8, %c0_9] : memref<8x64xf32, #tpu.memory_space<vmem>>, vector<8x64xf32>
    tpu.vector_store %arg7[%c0_8, %c0_9], %41 {strides = array<i32>} : memref<8x64xf32, #tpu.memory_space<vmem>>, vector<8x64xf32>,
    %cst_10 = arith.constant 0.000000e+00 : f32
    %43 = vector.broadcast %cst_10 : f32 to vector<8x10xf32>
    %c0_11 = arith.constant 0 : index
    %c0_12 = arith.constant 0 : index
    %44 = vector.load %arg8[%c0_11, %c0_12] : memref<8x10xf32, #tpu.memory_space<vmem>>, vector<8x10xf32>
    tpu.vector_store %arg8[%c0_11, %c0_12], %43 {strides = array<i32>} : memref<8x10xf32, #tpu.memory_space<vmem>>, vector<8x10xf32>,
    %cst_13 = arith.constant 0.000000e+00 : f32
    %45 = vector.broadcast %cst_13 : f32 to vector<8x10xf32>
    %c0_14 = arith.constant 0 : index
    %c0_15 = arith.constant 0 : index
    %46 = vector.load %arg9[%c0_14, %c0_15] : memref<8x10xf32, #tpu.memory_space<vmem>>, vector<8x10xf32>
    tpu.vector_store %arg9[%c0_14, %c0_15], %45 {strides = array<i32>} : memref<8x10xf32, #tpu.memory_space<vmem>>, vector<8x10xf32>,
    %c0_i32_16 = arith.constant 0 : i32
    %c8_i32_17 = arith.constant 8 : i32
    %47 = arith.muli %c0_i32_16, %c8_i32_17 : i32
    %c0_18 = arith.constant 0 : index
    %c0_19 = arith.constant 0 : index
    %48 = vector.load %arg7[%c0_18, %c0_19] : memref<8x64xf32, #tpu.memory_space<vmem>>, vector<8x64xf32>
    %cst_20 = arith.constant dense<0x7F800000> : vector<8xf32>
    %49 = vector.multi_reduction <minimumf>, %48, %cst_20 [1] : vector<8x64xf32> to vector<8xf32>
    %50 = vector.shape_cast %49 : vector<8xf32> to vector<8x1xf32>
    %51 = vector.broadcast %50 : vector<8x1xf32> to vector<8x64xf32>
    %52 = arith.cmpf oeq, %48, %51 : vector<8x64xf32>
    %c64_i32 = arith.constant 64 : i32
    %53 = vector.broadcast %c64_i32 : i32 to vector<8x64xi32>
    %54 = arith.select %52, %11, %53 : vector<8x64xi1>, vector<8x64xi32>
    %cst_21 = arith.constant dense<2147483647> : vector<8xi32>
    %55 = vector.multi_reduction <minsi>, %54, %cst_21 [1] : vector<8x64xi32> to vector<8xi32>
    %56 = vector.shape_cast %55 : vector<8xi32> to vector<8x1xi32>
    %57 = vector.broadcast %56 : vector<8x1xi32> to vector<8x64xi32>
    %58 = arith.cmpi eq, %11, %57 : vector<8x64xi32>
    %cst_22 = arith.constant 1.000000e+10 : f32
    %59 = vector.broadcast %cst_22 : f32 to vector<8x64xf32>
    %60 = arith.select %58, %59, %48 : vector<8x64xi1>, vector<8x64xf32>
    %cst_23 = arith.constant dense<0x7F800000> : vector<8xf32>
    %61 = vector.multi_reduction <minimumf>, %60, %cst_23 [1] : vector<8x64xf32> to vector<8xf32>
    %62 = vector.shape_cast %61 : vector<8xf32> to vector<8x1xf32>
    %63 = vector.broadcast %62 : vector<8x1xf32> to vector<8x64xf32>
    %64 = arith.cmpf oeq, %60, %63 : vector<8x64xf32>
    %c64_i32_24 = arith.constant 64 : i32
    %65 = vector.broadcast %c64_i32_24 : i32 to vector<8x64xi32>
    %66 = arith.select %64, %11, %65 : vector<8x64xi1>, vector<8x64xi32>
    %cst_25 = arith.constant dense<2147483647> : vector<8xi32>
    %67 = vector.multi_reduction <minsi>, %66, %cst_25 [1] : vector<8x64xi32> to vector<8xi32>
    %68 = vector.shape_cast %67 : vector<8xi32> to vector<8x1xi32>
    %69 = vector.broadcast %68 : vector<8x1xi32> to vector<8x64xi32>
    %70 = arith.cmpi eq, %11, %69 : vector<8x64xi32>
    %cst_26 = arith.constant 1.000000e+10 : f32
    %71 = vector.broadcast %cst_26 : f32 to vector<8x64xf32>
    %72 = arith.select %70, %71, %60 : vector<8x64xi1>, vector<8x64xf32>
    %cst_27 = arith.constant dense<0x7F800000> : vector<8xf32>
    %73 = vector.multi_reduction <minimumf>, %72, %cst_27 [1] : vector<8x64xf32> to vector<8xf32>
    %74 = vector.shape_cast %73 : vector<8xf32> to vector<8x1xf32>
    %75 = vector.broadcast %74 : vector<8x1xf32> to vector<8x64xf32>
    %76 = arith.cmpf oeq, %72, %75 : vector<8x64xf32>
    %c64_i32_28 = arith.constant 64 : i32
    %77 = vector.broadcast %c64_i32_28 : i32 to vector<8x64xi32>
    %78 = arith.select %76, %11, %77 : vector<8x64xi1>, vector<8x64xi32>
    %cst_29 = arith.constant dense<2147483647> : vector<8xi32>
    %79 = vector.multi_reduction <minsi>, %78, %cst_29 [1] : vector<8x64xi32> to vector<8xi32>
    %80 = vector.shape_cast %79 : vector<8xi32> to vector<8x1xi32>
    %81 = vector.broadcast %80 : vector<8x1xi32> to vector<8x64xi32>
    %82 = arith.cmpi eq, %11, %81 : vector<8x64xi32>
    %cst_30 = arith.constant 1.000000e+10 : f32
    %83 = vector.broadcast %cst_30 : f32 to vector<8x64xf32>
    %84 = arith.select %82, %83, %72 : vector<8x64xi1>, vector<8x64xf32>
    %cst_31 = arith.constant dense<0x7F800000> : vector<8xf32>
    %85 = vector.multi_reduction <minimumf>, %84, %cst_31 [1] : vector<8x64xf32> to vector<8xf32>
    %86 = vector.shape_cast %85 : vector<8xf32> to vector<8x1xf32>
    %87 = vector.broadcast %86 : vector<8x1xf32> to vector<8x64xf32>
    %88 = arith.cmpf oeq, %84, %87 : vector<8x64xf32>
    %c64_i32_32 = arith.constant 64 : i32
    %89 = vector.broadcast %c64_i32_32 : i32 to vector<8x64xi32>
    %90 = arith.select %88, %11, %89 : vector<8x64xi1>, vector<8x64xi32>
    %cst_33 = arith.constant dense<2147483647> : vector<8xi32>
    %91 = vector.multi_reduction <minsi>, %90, %cst_33 [1] : vector<8x64xi32> to vector<8xi32>
    %92 = vector.shape_cast %91 : vector<8xi32> to vector<8x1xi32>
    %93 = vector.broadcast %92 : vector<8x1xi32> to vector<8x64xi32>
    %94 = arith.cmpi eq, %11, %93 : vector<8x64xi32>
    %cst_34 = arith.constant 1.000000e+10 : f32
    %95 = vector.broadcast %cst_34 : f32 to vector<8x64xf32>
    %96 = arith.select %94, %95, %84 : vector<8x64xi1>, vector<8x64xf32>
    %cst_35 = arith.constant dense<0x7F800000> : vector<8xf32>
    %97 = vector.multi_reduction <minimumf>, %96, %cst_35 [1] : vector<8x64xf32> to vector<8xf32>
    %98 = vector.shape_cast %97 : vector<8xf32> to vector<8x1xf32>
    %99 = vector.broadcast %98 : vector<8x1xf32> to vector<8x64xf32>
    %100 = arith.cmpf oeq, %96, %99 : vector<8x64xf32>
    %c64_i32_36 = arith.constant 64 : i32
    %101 = vector.broadcast %c64_i32_36 : i32 to vector<8x64xi32>
    %102 = arith.select %100, %11, %101 : vector<8x64xi1>, vector<8x64xi32>
    %cst_37 = arith.constant dense<2147483647> : vector<8xi32>
    %103 = vector.multi_reduction <minsi>, %102, %cst_37 [1] : vector<8x64xi32> to vector<8xi32>
    %104 = vector.shape_cast %103 : vector<8xi32> to vector<8x1xi32>
    %105 = vector.broadcast %104 : vector<8x1xi32> to vector<8x64xi32>
    %106 = arith.cmpi eq, %11, %105 : vector<8x64xi32>
    %cst_38 = arith.constant 1.000000e+10 : f32
    %107 = vector.broadcast %cst_38 : f32 to vector<8x64xf32>
    %108 = arith.select %106, %107, %96 : vector<8x64xi1>, vector<8x64xf32>
    %cst_39 = arith.constant dense<0x7F800000> : vector<8xf32>
    %109 = vector.multi_reduction <minimumf>, %108, %cst_39 [1] : vector<8x64xf32> to vector<8xf32>
    %110 = vector.shape_cast %109 : vector<8xf32> to vector<8x1xf32>
    %111 = vector.broadcast %110 : vector<8x1xf32> to vector<8x64xf32>
    %112 = arith.cmpf oeq, %108, %111 : vector<8x64xf32>
    %c64_i32_40 = arith.constant 64 : i32
    %113 = vector.broadcast %c64_i32_40 : i32 to vector<8x64xi32>
    %114 = arith.select %112, %11, %113 : vector<8x64xi1>, vector<8x64xi32>
    %cst_41 = arith.constant dense<2147483647> : vector<8xi32>
    %115 = vector.multi_reduction <minsi>, %114, %cst_41 [1] : vector<8x64xi32> to vector<8xi32>
    %116 = vector.shape_cast %115 : vector<8xi32> to vector<8x1xi32>
    %117 = vector.broadcast %116 : vector<8x1xi32> to vector<8x64xi32>
    %118 = arith.cmpi eq, %11, %117 : vector<8x64xi32>
    %cst_42 = arith.constant 1.000000e+10 : f32
    %119 = vector.broadcast %cst_42 : f32 to vector<8x64xf32>
    %120 = arith.select %118, %119, %108 : vector<8x64xi1>, vector<8x64xf32>
    %cst_43 = arith.constant dense<0x7F800000> : vector<8xf32>
    %121 = vector.multi_reduction <minimumf>, %120, %cst_43 [1] : vector<8x64xf32> to vector<8xf32>
    %122 = vector.shape_cast %121 : vector<8xf32> to vector<8x1xf32>
    %123 = vector.broadcast %122 : vector<8x1xf32> to vector<8x64xf32>
    %124 = arith.cmpf oeq, %120, %123 : vector<8x64xf32>
    %c64_i32_44 = arith.constant 64 : i32
    %125 = vector.broadcast %c64_i32_44 : i32 to vector<8x64xi32>
    %126 = arith.select %124, %11, %125 : vector<8x64xi1>, vector<8x64xi32>
    %cst_45 = arith.constant dense<2147483647> : vector<8xi32>
    %127 = vector.multi_reduction <minsi>, %126, %cst_45 [1] : vector<8x64xi32> to vector<8xi32>
    %128 = vector.shape_cast %127 : vector<8xi32> to vector<8x1xi32>
    %129 = vector.broadcast %128 : vector<8x1xi32> to vector<8x64xi32>
    %130 = arith.cmpi eq, %11, %129 : vector<8x64xi32>
    %cst_46 = arith.constant 1.000000e+10 : f32
    %131 = vector.broadcast %cst_46 : f32 to vector<8x64xf32>
    %132 = arith.select %130, %131, %120 : vector<8x64xi1>, vector<8x64xf32>
    %cst_47 = arith.constant dense<0x7F800000> : vector<8xf32>
    %133 = vector.multi_reduction <minimumf>, %132, %cst_47 [1] : vector<8x64xf32> to vector<8xf32>
    %134 = vector.shape_cast %133 : vector<8xf32> to vector<8x1xf32>
    %135 = vector.broadcast %134 : vector<8x1xf32> to vector<8x64xf32>
    %136 = arith.cmpf oeq, %132, %135 : vector<8x64xf32>
    %c64_i32_48 = arith.constant 64 : i32
    %137 = vector.broadcast %c64_i32_48 : i32 to vector<8x64xi32>
    %138 = arith.select %136, %11, %137 : vector<8x64xi1>, vector<8x64xi32>
    %cst_49 = arith.constant dense<2147483647> : vector<8xi32>
    %139 = vector.multi_reduction <minsi>, %138, %cst_49 [1] : vector<8x64xi32> to vector<8xi32>
    %140 = vector.shape_cast %139 : vector<8xi32> to vector<8x1xi32>
    %141 = vector.broadcast %140 : vector<8x1xi32> to vector<8x64xi32>
    %142 = arith.cmpi eq, %11, %141 : vector<8x64xi32>
    %cst_50 = arith.constant 1.000000e+10 : f32
    %143 = vector.broadcast %cst_50 : f32 to vector<8x64xf32>
    %144 = arith.select %142, %143, %132 : vector<8x64xi1>, vector<8x64xf32>
    %c0_51 = arith.constant 0 : index
    %c0_52 = arith.constant 0 : index
    %145 = vector.load %arg7[%c0_51, %c0_52] : memref<8x64xf32, #tpu.memory_space<vmem>>, vector<8x64xf32>
    tpu.vector_store %arg7[%c0_51, %c0_52], %144 {strides = array<i32>} : memref<8x64xf32, #tpu.memory_space<vmem>>, vector<8x64xf32>,
    %146 = tpu.concatenate %56, %68, %80, %92, %104, %116, %128, %140 in 0 : vector<8x1xi32>, vector<8x1xi32>, vector<8x1xi32>, vector<8x1xi32>, vector<8x1xi32>, vector<8x1xi32>, vector<8x1xi32>, vector<8x1xi32> -> vector<64x1xi32>
    %147 = tpu.iota {dimensions = array<i32: 1>} : vector<64x64xi32>
    %148 = vector.broadcast %146 : vector<64x1xi32> to vector<64x64xi32>
    %149 = arith.cmpi eq, %147, %148 : vector<64x64xi32>
    %150 = arith.extui %149 : vector<64x64xi1> to vector<64x64xi32>
    %151 = arith.sitofp %150 : vector<64x64xi32> to vector<64x64xf32>
    %c0_53 = arith.constant 0 : index
    %c0_54 = arith.constant 0 : index
    %c0_55 = arith.constant 0 : index
    %152 = vector.load %arg1[%c0_53, %c0_54, %c0_55] : memref<1x64x19xf32, #tpu.memory_space<vmem>>, vector<1x64x19xf32>
    %153 = vector.shape_cast %152 : vector<1x64x19xf32> to vector<64x19xf32>
    %cst_56 = arith.constant dense<0.000000e+00> : vector<64x19xf32>
    %154 = tpu.matmul %151, %153, %cst_56 {dimension_numbers = #tpu.dot_dimension_numbers<[1], [0], [0], [1], [0, 0, 1, 1], [], []>} : vector<64x64xf32>, vector<64x19xf32>, vector<64x19xf32> -> vector<64x19xf32>
    %155 = vector.extract_strided_slice %154 {offsets = [0, 0], sizes = [8, 19], strides = [1, 1]} : vector<64x19xf32> to vector<8x19xf32>
    %156 = vector.extract_strided_slice %155 {offsets = [0, 16], sizes = [8, 3], strides = [1, 1]} : vector<8x19xf32> to vector<8x3xf32>
    %157 = arith.subf %156, %16 : vector<8x3xf32>
    %158 = vector.extract_strided_slice %157 {offsets = [0, 0], sizes = [8, 1], strides = [1, 1]} : vector<8x3xf32> to vector<8x1xf32>
    %159 = vector.extract_strided_slice %157 {offsets = [0, 0], sizes = [8, 1], strides = [1, 1]} : vector<8x3xf32> to vector<8x1xf32>
    %160 = arith.mulf %158, %159 : vector<8x1xf32>
    %161 = vector.extract_strided_slice %157 {offsets = [0, 1], sizes = [8, 1], strides = [1, 1]} : vector<8x3xf32> to vector<8x1xf32>
    %162 = vector.extract_strided_slice %157 {offsets = [0, 1], sizes = [8, 1], strides = [1, 1]} : vector<8x3xf32> to vector<8x1xf32>
    %163 = arith.mulf %161, %162 : vector<8x1xf32>
    %164 = arith.addf %160, %163 : vector<8x1xf32>
    %165 = vector.extract_strided_slice %157 {offsets = [0, 2], sizes = [8, 1], strides = [1, 1]} : vector<8x3xf32> to vector<8x1xf32>
    %166 = vector.extract_strided_slice %157 {offsets = [0, 2], sizes = [8, 1], strides = [1, 1]} : vector<8x3xf32> to vector<8x1xf32>
    %167 = arith.mulf %165, %166 : vector<8x1xf32>
    %168 = arith.addf %164, %167 : vector<8x1xf32>
    %169 = math.sqrt %168 : vector<8x1xf32>
    %170 = tpu.concatenate %169, %157, %16, %156 in 1 : vector<8x1xf32>, vector<8x3xf32>, vector<8x3xf32>, vector<8x3xf32> -> vector<8x10xf32>
    %171 = vector.extract_strided_slice %155 {offsets = [0, 0], sizes = [8, 16], strides = [1, 1]} : vector<8x19xf32> to vector<8x16xf32>
    %172 = vector.shape_cast %171 : vector<8x16xf32> to vector<8x1x16xf32>
    %173 = vector.extract_strided_slice %154 {offsets = [8, 0], sizes = [8, 19], strides = [1, 1]} : vector<64x19xf32> to vector<8x19xf32>
    %174 = vector.extract_strided_slice %173 {offsets = [0, 16], sizes = [8, 3], strides = [1, 1]} : vector<8x19xf32> to vector<8x3xf32>
    %175 = arith.subf %174, %16 : vector<8x3xf32>
    %176 = vector.extract_strided_slice %175 {offsets = [0, 0], sizes = [8, 1], strides = [1, 1]} : vector<8x3xf32> to vector<8x1xf32>
    %177 = vector.extract_strided_slice %175 {offsets = [0, 0], sizes = [8, 1], strides = [1, 1]} : vector<8x3xf32> to vector<8x1xf32>
    %178 = arith.mulf %176, %177 : vector<8x1xf32>
    %179 = vector.extract_strided_slice %175 {offsets = [0, 1], sizes = [8, 1], strides = [1, 1]} : vector<8x3xf32> to vector<8x1xf32>
    %180 = vector.extract_strided_slice %175 {offsets = [0, 1], sizes = [8, 1], strides = [1, 1]} : vector<8x3xf32> to vector<8x1xf32>
    %181 = arith.mulf %179, %180 : vector<8x1xf32>
    %182 = arith.addf %178, %181 : vector<8x1xf32>
    %183 = vector.extract_strided_slice %175 {offsets = [0, 2], sizes = [8, 1], strides = [1, 1]} : vector<8x3xf32> to vector<8x1xf32>
    %184 = vector.extract_strided_slice %175 {offsets = [0, 2], sizes = [8, 1], strides = [1, 1]} : vector<8x3xf32> to vector<8x1xf32>
    %185 = arith.mulf %183, %184 : vector<8x1xf32>
    %186 = arith.addf %182, %185 : vector<8x1xf32>
    %187 = math.sqrt %186 : vector<8x1xf32>
    %188 = tpu.concatenate %187, %175, %16, %174 in 1 : vector<8x1xf32>, vector<8x3xf32>, vector<8x3xf32>, vector<8x3xf32> -> vector<8x10xf32>
    %189 = vector.extract_strided_slice %173 {offsets = [0, 0], sizes = [8, 16], strides = [1, 1]} : vector<8x19xf32> to vector<8x16xf32>
    %190 = vector.shape_cast %189 : vector<8x16xf32> to vector<8x1x16xf32>
    %191 = vector.extract_strided_slice %154 {offsets = [16, 0], sizes = [8, 19], strides = [1, 1]} : vector<64x19xf32> to vector<8x19xf32>
    %192 = vector.extract_strided_slice %191 {offsets = [0, 16], sizes = [8, 3], strides = [1, 1]} : vector<8x19xf32> to vector<8x3xf32>
    %193 = arith.subf %192, %16 : vector<8x3xf32>
    %194 = vector.extract_strided_slice %193 {offsets = [0, 0], sizes = [8, 1], strides = [1, 1]} : vector<8x3xf32> to vector<8x1xf32>
    %195 = vector.extract_strided_slice %193 {offsets = [0, 0], sizes = [8, 1], strides = [1, 1]} : vector<8x3xf32> to vector<8x1xf32>
    %196 = arith.mulf %194, %195 : vector<8x1xf32>
    %197 = vector.extract_strided_slice %193 {offsets = [0, 1], sizes = [8, 1], strides = [1, 1]} : vector<8x3xf32> to vector<8x1xf32>
    %198 = vector.extract_strided_slice %193 {offsets = [0, 1], sizes = [8, 1], strides = [1, 1]} : vector<8x3xf32> to vector<8x1xf32>
    %199 = arith.mulf %197, %198 : vector<8x1xf32>
    %200 = arith.addf %196, %199 : vector<8x1xf32>
    %201 = vector.extract_strided_slice %193 {offsets = [0, 2], sizes = [8, 1], strides = [1, 1]} : vector<8x3xf32> to vector<8x1xf32>
    %202 = vector.extract_strided_slice %193 {offsets = [0, 2], sizes = [8, 1], strides = [1, 1]} : vector<8x3xf32> to vector<8x1xf32>
    %203 = arith.mulf %201, %202 : vector<8x1xf32>
    %204 = arith.addf %200, %203 : vector<8x1xf32>
    %205 = math.sqrt %204 : vector<8x1xf32>
    %206 = tpu.concatenate %205, %193, %16, %192 in 1 : vector<8x1xf32>, vector<8x3xf32>, vector<8x3xf32>, vector<8x3xf32> -> vector<8x10xf32>
    %207 = vector.extract_strided_slice %191 {offsets = [0, 0], sizes = [8, 16], strides = [1, 1]} : vector<8x19xf32> to vector<8x16xf32>
    %208 = vector.shape_cast %207 : vector<8x16xf32> to vector<8x1x16xf32>
    %209 = vector.extract_strided_slice %154 {offsets = [24, 0], sizes = [8, 19], strides = [1, 1]} : vector<64x19xf32> to vector<8x19xf32>
    %210 = vector.extract_strided_slice %209 {offsets = [0, 16], sizes = [8, 3], strides = [1, 1]} : vector<8x19xf32> to vector<8x3xf32>
    %211 = arith.subf %210, %16 : vector<8x3xf32>
    %212 = vector.extract_strided_slice %211 {offsets = [0, 0], sizes = [8, 1], strides = [1, 1]} : vector<8x3xf32> to vector<8x1xf32>
    %213 = vector.extract_strided_slice %211 {offsets = [0, 0], sizes = [8, 1], strides = [1, 1]} : vector<8x3xf32> to vector<8x1xf32>
    %214 = arith.mulf %212, %213 : vector<8x1xf32>
    %215 = vector.extract_strided_slice %211 {offsets = [0, 1], sizes = [8, 1], strides = [1, 1]} : vector<8x3xf32> to vector<8x1xf32>
    %216 = vector.extract_strided_slice %211 {offsets = [0, 1], sizes = [8, 1], strides = [1, 1]} : vector<8x3xf32> to vector<8x1xf32>
    %217 = arith.mulf %215, %216 : vector<8x1xf32>
    %218 = arith.addf %214, %217 : vector<8x1xf32>
    %219 = vector.extract_strided_slice %211 {offsets = [0, 2], sizes = [8, 1], strides = [1, 1]} : vector<8x3xf32> to vector<8x1xf32>
    %220 = vector.extract_strided_slice %211 {offsets = [0, 2], sizes = [8, 1], strides = [1, 1]} : vector<8x3xf32> to vector<8x1xf32>
    %221 = arith.mulf %219, %220 : vector<8x1xf32>
    %222 = arith.addf %218, %221 : vector<8x1xf32>
    %223 = math.sqrt %222 : vector<8x1xf32>
    %224 = tpu.concatenate %223, %211, %16, %210 in 1 : vector<8x1xf32>, vector<8x3xf32>, vector<8x3xf32>, vector<8x3xf32> -> vector<8x10xf32>
    %225 = vector.extract_strided_slice %209 {offsets = [0, 0], sizes = [8, 16], strides = [1, 1]} : vector<8x19xf32> to vector<8x16xf32>
    %226 = vector.shape_cast %225 : vector<8x16xf32> to vector<8x1x16xf32>
    %227 = vector.extract_strided_slice %154 {offsets = [32, 0], sizes = [8, 19], strides = [1, 1]} : vector<64x19xf32> to vector<8x19xf32>
    %228 = vector.extract_strided_slice %227 {offsets = [0, 16], sizes = [8, 3], strides = [1, 1]} : vector<8x19xf32> to vector<8x3xf32>
    %229 = arith.subf %228, %16 : vector<8x3xf32>
    %230 = vector.extract_strided_slice %229 {offsets = [0, 0], sizes = [8, 1], strides = [1, 1]} : vector<8x3xf32> to vector<8x1xf32>
    %231 = vector.extract_strided_slice %229 {offsets = [0, 0], sizes = [8, 1], strides = [1, 1]} : vector<8x3xf32> to vector<8x1xf32>
    %232 = arith.mulf %230, %231 : vector<8x1xf32>
    %233 = vector.extract_strided_slice %229 {offsets = [0, 1], sizes = [8, 1], strides = [1, 1]} : vector<8x3xf32> to vector<8x1xf32>
    %234 = vector.extract_strided_slice %229 {offsets = [0, 1], sizes = [8, 1], strides = [1, 1]} : vector<8x3xf32> to vector<8x1xf32>
    %235 = arith.mulf %233, %234 : vector<8x1xf32>
    %236 = arith.addf %232, %235 : vector<8x1xf32>
    %237 = vector.extract_strided_slice %229 {offsets = [0, 2], sizes = [8, 1], strides = [1, 1]} : vector<8x3xf32> to vector<8x1xf32>
    %238 = vector.extract_strided_slice %229 {offsets = [0, 2], sizes = [8, 1], strides = [1, 1]} : vector<8x3xf32> to vector<8x1xf32>
    %239 = arith.mulf %237, %238 : vector<8x1xf32>
    %240 = arith.addf %236, %239 : vector<8x1xf32>
    %241 = math.sqrt %240 : vector<8x1xf32>
    %242 = tpu.concatenate %241, %229, %16, %228 in 1 : vector<8x1xf32>, vector<8x3xf32>, vector<8x3xf32>, vector<8x3xf32> -> vector<8x10xf32>
    %243 = vector.extract_strided_slice %227 {offsets = [0, 0], sizes = [8, 16], strides = [1, 1]} : vector<8x19xf32> to vector<8x16xf32>
    %244 = vector.shape_cast %243 : vector<8x16xf32> to vector<8x1x16xf32>
    %245 = vector.extract_strided_slice %154 {offsets = [40, 0], sizes = [8, 19], strides = [1, 1]} : vector<64x19xf32> to vector<8x19xf32>
    %246 = vector.extract_strided_slice %245 {offsets = [0, 16], sizes = [8, 3], strides = [1, 1]} : vector<8x19xf32> to vector<8x3xf32>
    %247 = arith.subf %246, %16 : vector<8x3xf32>
    %248 = vector.extract_strided_slice %247 {offsets = [0, 0], sizes = [8, 1], strides = [1, 1]} : vector<8x3xf32> to vector<8x1xf32>
    %249 = vector.extract_strided_slice %247 {offsets = [0, 0], sizes = [8, 1], strides = [1, 1]} : vector<8x3xf32> to vector<8x1xf32>
    %250 = arith.mulf %248, %249 : vector<8x1xf32>
    %251 = vector.extract_strided_slice %247 {offsets = [0, 1], sizes = [8, 1], strides = [1, 1]} : vector<8x3xf32> to vector<8x1xf32>
    %252 = vector.extract_strided_slice %247 {offsets = [0, 1], sizes = [8, 1], strides = [1, 1]} : vector<8x3xf32> to vector<8x1xf32>
    %253 = arith.mulf %251, %252 : vector<8x1xf32>
    %254 = arith.addf %250, %253 : vector<8x1xf32>
    %255 = vector.extract_strided_slice %247 {offsets = [0, 2], sizes = [8, 1], strides = [1, 1]} : vector<8x3xf32> to vector<8x1xf32>
    %256 = vector.extract_strided_slice %247 {offsets = [0, 2], sizes = [8, 1], strides = [1, 1]} : vector<8x3xf32> to vector<8x1xf32>
    %257 = arith.mulf %255, %256 : vector<8x1xf32>
    %258 = arith.addf %254, %257 : vector<8x1xf32>
    %259 = math.sqrt %258 : vector<8x1xf32>
    %260 = tpu.concatenate %259, %247, %16, %246 in 1 : vector<8x1xf32>, vector<8x3xf32>, vector<8x3xf32>, vector<8x3xf32> -> vector<8x10xf32>
    %261 = vector.extract_strided_slice %245 {offsets = [0, 0], sizes = [8, 16], strides = [1, 1]} : vector<8x19xf32> to vector<8x16xf32>
    %262 = vector.shape_cast %261 : vector<8x16xf32> to vector<8x1x16xf32>
    %263 = vector.extract_strided_slice %154 {offsets = [48, 0], sizes = [8, 19], strides = [1, 1]} : vector<64x19xf32> to vector<8x19xf32>
    %264 = vector.extract_strided_slice %263 {offsets = [0, 16], sizes = [8, 3], strides = [1, 1]} : vector<8x19xf32> to vector<8x3xf32>
    %265 = arith.subf %264, %16 : vector<8x3xf32>
    %266 = vector.extract_strided_slice %265 {offsets = [0, 0], sizes = [8, 1], strides = [1, 1]} : vector<8x3xf32> to vector<8x1xf32>
    %267 = vector.extract_strided_slice %265 {offsets = [0, 0], sizes = [8, 1], strides = [1, 1]} : vector<8x3xf32> to vector<8x1xf32>
    %268 = arith.mulf %266, %267 : vector<8x1xf32>
    %269 = vector.extract_strided_slice %265 {offsets = [0, 1], sizes = [8, 1], strides = [1, 1]} : vector<8x3xf32> to vector<8x1xf32>
    %270 = vector.extract_strided_slice %265 {offsets = [0, 1], sizes = [8, 1], strides = [1, 1]} : vector<8x3xf32> to vector<8x1xf32>
    %271 = arith.mulf %269, %270 : vector<8x1xf32>
    %272 = arith.addf %268, %271 : vector<8x1xf32>
    %273 = vector.extract_strided_slice %265 {offsets = [0, 2], sizes = [8, 1], strides = [1, 1]} : vector<8x3xf32> to vector<8x1xf32>
    %274 = vector.extract_strided_slice %265 {offsets = [0, 2], sizes = [8, 1], strides = [1, 1]} : vector<8x3xf32> to vector<8x1xf32>
    %275 = arith.mulf %273, %274 : vector<8x1xf32>
    %276 = arith.addf %272, %275 : vector<8x1xf32>
    %277 = math.sqrt %276 : vector<8x1xf32>
    %278 = tpu.concatenate %277, %265, %16, %264 in 1 : vector<8x1xf32>, vector<8x3xf32>, vector<8x3xf32>, vector<8x3xf32> -> vector<8x10xf32>
    %279 = vector.extract_strided_slice %263 {offsets = [0, 0], sizes = [8, 16], strides = [1, 1]} : vector<8x19xf32> to vector<8x16xf32>
    %280 = vector.shape_cast %279 : vector<8x16xf32> to vector<8x1x16xf32>
    %281 = vector.extract_strided_slice %154 {offsets = [56, 0], sizes = [8, 19], strides = [1, 1]} : vector<64x19xf32> to vector<8x19xf32>
    %282 = vector.extract_strided_slice %281 {offsets = [0, 16], sizes = [8, 3], strides = [1, 1]} : vector<8x19xf32> to vector<8x3xf32>
    %283 = arith.subf %282, %16 : vector<8x3xf32>
    %284 = vector.extract_strided_slice %283 {offsets = [0, 0], sizes = [8, 1], strides = [1, 1]} : vector<8x3xf32> to vector<8x1xf32>
    %285 = vector.extract_strided_slice %283 {offsets = [0, 0], sizes = [8, 1], strides = [1, 1]} : vector<8x3xf32> to vector<8x1xf32>
    %286 = arith.mulf %284, %285 : vector<8x1xf32>
    %287 = vector.extract_strided_slice %283 {offsets = [0, 1], sizes = [8, 1], strides = [1, 1]} : vector<8x3xf32> to vector<8x1xf32>
    %288 = vector.extract_strided_slice %283 {offsets = [0, 1], sizes = [8, 1], strides = [1, 1]} : vector<8x3xf32> to vector<8x1xf32>
    %289 = arith.mulf %287, %288 : vector<8x1xf32>
    %290 = arith.addf %286, %289 : vector<8x1xf32>
    %291 = vector.extract_strided_slice %283 {offsets = [0, 2], sizes = [8, 1], strides = [1, 1]} : vector<8x3xf32> to vector<8x1xf32>
    %292 = vector.extract_strided_slice %283 {offsets = [0, 2], sizes = [8, 1], strides = [1, 1]} : vector<8x3xf32> to vector<8x1xf32>
    %293 = arith.mulf %291, %292 : vector<8x1xf32>
    %294 = arith.addf %290, %293 : vector<8x1xf32>
    %295 = math.sqrt %294 : vector<8x1xf32>
    %296 = tpu.concatenate %295, %283, %16, %282 in 1 : vector<8x1xf32>, vector<8x3xf32>, vector<8x3xf32>, vector<8x3xf32> -> vector<8x10xf32>
    %297 = vector.extract_strided_slice %281 {offsets = [0, 0], sizes = [8, 16], strides = [1, 1]} : vector<8x19xf32> to vector<8x16xf32>
    %298 = vector.shape_cast %297 : vector<8x16xf32> to vector<8x1x16xf32>
    %299 = tpu.concatenate %172, %190, %208, %226, %244, %262, %280, %298 in 1 : vector<8x1x16xf32>, vector<8x1x16xf32>, vector<8x1x16xf32>, vector<8x1x16xf32>, vector<8x1x16xf32>, vector<8x1x16xf32>, vector<8x1x16xf32>, vector<8x1x16xf32> -> vector<8x8x16xf32>
    %c0_57 = arith.constant 0 : index
    %c0_58 = arith.constant 0 : index
    %300 = arith.index_cast %47 : i32 to index
    %c0_59 = arith.constant 0 : index
    %301 = vector.load %arg5[%c0_57, %c0_58, %300, %c0_59] : memref<1x8x8x32xf32, #tpu.memory_space<vmem>>, vector<1x8x8x16xf32>
    %302 = vector.shape_cast %301 : vector<1x8x8x16xf32> to vector<8x8x16xf32>
    %303 = vector.shape_cast %299 : vector<8x8x16xf32> to vector<1x8x8x16xf32>
    tpu.vector_store %arg5[%c0_57, %c0_58, %300, %c0_59], %303 {strides = array<i32>} : memref<1x8x8x32xf32, #tpu.memory_space<vmem>>, vector<1x8x8x16xf32>,
    %304 = tpu.concatenate %170, %188, %206, %224, %242, %260, %278, %296 in 1 : vector<8x10xf32>, vector<8x10xf32>, vector<8x10xf32>, vector<8x10xf32>, vector<8x10xf32>, vector<8x10xf32>, vector<8x10xf32>, vector<8x10xf32> -> vector<8x80xf32>
    %c0_60 = arith.constant 0 : index
    %305 = arith.index_cast %c0_i32_16 : i32 to index
    %c0_61 = arith.constant 0 : index
    %c0_62 = arith.constant 0 : index
    %306 = vector.load %arg4[%c0_60, %305, %c0_61, %c0_62] : memref<1x1x8x80xf32, #tpu.memory_space<vmem>>, vector<1x1x8x80xf32>
    %307 = vector.shape_cast %306 : vector<1x1x8x80xf32> to vector<8x80xf32>
    %308 = vector.shape_cast %304 : vector<8x80xf32> to vector<1x1x8x80xf32>
    tpu.vector_store %arg4[%c0_60, %305, %c0_61, %c0_62], %308 {strides = array<i32>} : memref<1x1x8x80xf32, #tpu.memory_space<vmem>>, vector<1x1x8x80xf32>,
    %309 = arith.mulf %170, %170 : vector<8x10xf32>
    %310 = arith.addf %170, %188 : vector<8x10xf32>
    %311 = arith.mulf %188, %188 : vector<8x10xf32>
    %312 = arith.addf %309, %311 : vector<8x10xf32>
    %313 = arith.addf %310, %206 : vector<8x10xf32>
    %314 = arith.mulf %206, %206 : vector<8x10xf32>
    %315 = arith.addf %312, %314 : vector<8x10xf32>
    %316 = arith.addf %313, %224 : vector<8x10xf32>
    %317 = arith.mulf %224, %224 : vector<8x10xf32>
    %318 = arith.addf %315, %317 : vector<8x10xf32>
    %319 = arith.addf %316, %242 : vector<8x10xf32>
    %320 = arith.mulf %242, %242 : vector<8x10xf32>
    %321 = arith.addf %318, %320 : vector<8x10xf32>
    %322 = arith.addf %319, %260 : vector<8x10xf32>
    %323 = arith.mulf %260, %260 : vector<8x10xf32>
    %324 = arith.addf %321, %323 : vector<8x10xf32>
    %325 = arith.addf %322, %278 : vector<8x10xf32>
    %326 = arith.mulf %278, %278 : vector<8x10xf32>
    %327 = arith.addf %324, %326 : vector<8x10xf32>
    %328 = arith.addf %325, %296 : vector<8x10xf32>
    %329 = arith.mulf %296, %296 : vector<8x10xf32>
    %330 = arith.addf %327, %329 : vector<8x10xf32>
    %c0_63 = arith.constant 0 : index
    %c0_64 = arith.constant 0 : index
    %331 = vector.load %arg8[%c0_63, %c0_64] : memref<8x10xf32, #tpu.memory_space<vmem>>, vector<8x10xf32>
    %332 = arith.addf %331, %328 : vector<8x10xf32>
    %c0_65 = arith.constant 0 : index
    %c0_66 = arith.constant 0 : index
    %333 = vector.load %arg8[%c0_65, %c0_66] : memref<8x10xf32, #tpu.memory_space<vmem>>, vector<8x10xf32>
    tpu.vector_store %arg8[%c0_65, %c0_66], %332 {strides = array<i32>} : memref<8x10xf32, #tpu.memory_space<vmem>>, vector<8x10xf32>,
    %c0_67 = arith.constant 0 : index
    %c0_68 = arith.constant 0 : index
    %334 = vector.load %arg9[%c0_67, %c0_68] : memref<8x10xf32, #tpu.memory_space<vmem>>, vector<8x10xf32>
    %335 = arith.addf %334, %330 : vector<8x10xf32>
    %c0_69 = arith.constant 0 : index
    %c0_70 = arith.constant 0 : index
    %336 = vector.load %arg9[%c0_69, %c0_70] : memref<8x10xf32, #tpu.memory_space<vmem>>, vector<8x10xf32>
    tpu.vector_store %arg9[%c0_69, %c0_70], %335 {strides = array<i32>} : memref<8x10xf32, #tpu.memory_space<vmem>>, vector<8x10xf32>,
    %c1_i32_71 = arith.constant 1 : i32
    %c0_72 = arith.constant 0 : index
    %c0_73 = arith.constant 0 : index
    %337 = vector.load %arg6[%c0_72, %c0_73] : memref<8x16xf32, #tpu.memory_space<vmem>>, vector<8x16xf32>
    %338 = vector.shape_cast %337 : vector<8x16xf32> to vector<8x1x16xf32>
    %339 = vector.shape_cast %338 : vector<8x1x16xf32> to vector<8x1x16xf32>
    %340 = vector.broadcast %339 : vector<8x1x16xf32> to vector<8x8x16xf32>
    %c0_74 = arith.constant 0 : index
    %c0_75 = arith.constant 0 : index
    %c0_76 = arith.constant 0 : index
    %c16 = arith.constant 16 : index
    %341 = vector.load %arg5[%c0_74, %c0_75, %c0_76, %c16] : memref<1x8x8x32xf32, #tpu.memory_space<vmem>>, vector<1x8x8x16xf32>
    %342 = vector.shape_cast %341 : vector<1x8x8x16xf32> to vector<8x8x16xf32>
    %343 = vector.shape_cast %340 : vector<8x8x16xf32> to vector<1x8x8x16xf32>
    tpu.vector_store %arg5[%c0_74, %c0_75, %c0_76, %c16], %343 {strides = array<i32>} : memref<1x8x8x32xf32, #tpu.memory_space<vmem>>, vector<1x8x8x16xf32>,
    %c0_77 = arith.constant 0 : index
    %c0_78 = arith.constant 0 : index
    %344 = vector.load %arg8[%c0_77, %c0_78] : memref<8x10xf32, #tpu.memory_space<vmem>>, vector<8x10xf32>
    %cst_79 = arith.constant 1.250000e-01 : f32
    %345 = vector.broadcast %cst_79 : f32 to vector<8x10xf32>
    %346 = arith.mulf %344, %345 : vector<8x10xf32>
    %c0_80 = arith.constant 0 : index
    %c0_81 = arith.constant 0 : index
    %347 = vector.load %arg9[%c0_80, %c0_81] : memref<8x10xf32, #tpu.memory_space<vmem>>, vector<8x10xf32>
    %348 = arith.mulf %344, %346 : vector<8x10xf32>
    %349 = arith.subf %347, %348 : vector<8x10xf32>
    %cst_82 = arith.constant 0.000000e+00 : f32
    %350 = vector.broadcast %cst_82 : f32 to vector<8x10xf32>
    %351 = arith.maximumf %349, %350 : vector<8x10xf32>
    %cst_83 = arith.constant 7.000000e+00 : f32
    %352 = vector.broadcast %cst_83 : f32 to vector<8x10xf32>
    %353 = arith.divf %351, %352 : vector<8x10xf32>
    %354 = math.sqrt %353 : vector<8x10xf32>
    %355 = tpu.concatenate %346, %346, %346, %346, %346, %346, %346, %346 in 1 : vector<8x10xf32>, vector<8x10xf32>, vector<8x10xf32>, vector<8x10xf32>, vector<8x10xf32>, vector<8x10xf32>, vector<8x10xf32>, vector<8x10xf32> -> vector<8x80xf32>
    %356 = vector.shape_cast %355 : vector<8x80xf32> to vector<1x8x80xf32>
    %357 = tpu.concatenate %354, %354, %354, %354, %354, %354, %354, %354 in 1 : vector<8x10xf32>, vector<8x10xf32>, vector<8x10xf32>, vector<8x10xf32>, vector<8x10xf32>, vector<8x10xf32>, vector<8x10xf32>, vector<8x10xf32> -> vector<8x80xf32>
    %358 = vector.shape_cast %357 : vector<8x80xf32> to vector<1x8x80xf32>
    %c0_84 = arith.constant 0 : index
    %c0_85 = arith.constant 0 : index
    %c0_86 = arith.constant 0 : index
    %c0_87 = arith.constant 0 : index
    %359 = vector.load %arg4[%c0_84, %c0_85, %c0_86, %c0_87] : memref<1x1x8x80xf32, #tpu.memory_space<vmem>>, vector<1x1x8x80xf32>
    %360 = vector.shape_cast %359 : vector<1x1x8x80xf32> to vector<1x8x80xf32>
    %361 = arith.subf %360, %356 : vector<1x8x80xf32>
    %cst_88 = arith.constant 9.99999993E-9 : f32
    %362 = vector.broadcast %cst_88 : f32 to vector<1x8x80xf32>
    %363 = arith.addf %358, %362 : vector<1x8x80xf32>
    %364 = arith.divf %361, %363 : vector<1x8x80xf32>
    %c0_89 = arith.constant 0 : index
    %c0_90 = arith.constant 0 : index
    %c0_91 = arith.constant 0 : index
    %c0_92 = arith.constant 0 : index
    %365 = vector.load %arg4[%c0_89, %c0_90, %c0_91, %c0_92] : memref<1x1x8x80xf32, #tpu.memory_space<vmem>>, vector<1x1x8x80xf32>
    %366 = vector.shape_cast %365 : vector<1x1x8x80xf32> to vector<1x8x80xf32>
    %367 = vector.shape_cast %364 : vector<1x8x80xf32> to vector<1x1x8x80xf32>
    tpu.vector_store %arg4[%c0_89, %c0_90, %c0_91, %c0_92], %367 {strides = array<i32>} : memref<1x1x8x80xf32, #tpu.memory_space<vmem>>, vector<1x1x8x80xf32>,
    return
  }
  func.func @transform_0(%arg0: i32) -> (i32, i32, i32) {
    %c0_i32 = arith.constant 0 : i32
    %c0_i32_0 = arith.constant 0 : i32
    %c0_i32_1 = arith.constant 0 : i32
    return %arg0, %c0_i32, %c0_i32_0 : i32, i32, i32
  }
  func.func @transform_1(%arg0: i32) -> (i32, i32, i32) {
    %c0_i32 = arith.constant 0 : i32
    %c0_i32_0 = arith.constant 0 : i32
    %c0_i32_1 = arith.constant 0 : i32
    return %arg0, %c0_i32, %c0_i32_0 : i32, i32, i32
  }
  func.func @transform_2(%arg0: i32) -> (i32, i32, i32) {
    %c0_i32 = arith.constant 0 : i32
    %c0_i32_0 = arith.constant 0 : i32
    %c0_i32_1 = arith.constant 0 : i32
    return %arg0, %c0_i32, %c0_i32_0 : i32, i32, i32
  }
  func.func @transform_3(%arg0: i32) -> (i32, i32, i32, i32) {
    %c0_i32 = arith.constant 0 : i32
    %c0_i32_0 = arith.constant 0 : i32
    %c0_i32_1 = arith.constant 0 : i32
    %c0_i32_2 = arith.constant 0 : i32
    return %arg0, %c0_i32, %c0_i32_0, %c0_i32_1 : i32, i32, i32, i32
  }
  func.func @transform_4(%arg0: i32) -> (i32, i32, i32, i32) {
    %c0_i32 = arith.constant 0 : i32
    %c0_i32_0 = arith.constant 0 : i32
    %c0_i32_1 = arith.constant 0 : i32
    %c0_i32_2 = arith.constant 0 : i32
    return %arg0, %c0_i32, %c0_i32_0, %c0_i32_1 : i32, i32, i32, i32
  }
}

</mosaic_0001>

<bundles_post_ra>
// kernel: local_grouper.1
= control target key start
LH: loop header
LB: loop body
LE: loop exit
PB: predicated region body
PF: predicated region fallthrough
CT: control target
= control target key end

     0   :  { %10 = vsyncpa [#allocation7], 0  ;;  %s3514_s0 = inlined_call_operand.vmem [shape: f32[2,64,19], index: 0, kind: input, shape index: {}]   ;;  %s3515_s1 = inlined_call_operand.vmem [shape: f32[2,3,64], index: 1, kind: input, shape index: {}]   ;;  %s3516_s2 = inlined_call_operand.vmem [shape: f32[2,8,3], index: 2, kind: output, shape index: {0}]   ;;  %s3517_s3 = inlined_call_operand.vmem [shape: f32[2,1,8,80], index: 3, kind: output, shape index: {1}]   ;;  %s3518_s4 = inlined_call_operand.hbm [shape: f32[2,8,8,32], index: 4, kind: output, shape index: {2}]  }
   0x1   :  { %12 = vsyncpa [#allocation7 + $0x1], 0  ;;  %s2581_s15 = smov 0   ;;  %s2583_s16 = smov 0  }
   0x2   :  { %s2585_s17 = smov 0   ;;  %s2587_s18 = smov 0  }
   0x3 LB: > { %s2602_s19 = sadd.s32 4294967295, %s2514_s18   ;;  %s2216_s20 = sadd.s32 4294967294, %s2514_s18   ;;  %s2514_s18 = sphi %s2587_s18, %s3530_s18   ;;  %s2510_s17 = sphi %s2585_s17, %s3529_s17   ;;  %s2506_s16 = sphi %s2583_s16, %s3528_s16   ;;  %s2502_s15 = sphi %s2581_s15, %s3527_s15  }
   0x4   : > { %s2606_s21 = sadd.s32 1, %s2514_s18   ;;  %s129_s22 = sadd.s32 1, %s2510_s17 }
   0x5   : > { %s126_s23 = ssub.s32 %s2514_s18, %s2606_s21  ;;  %p139_p0 = scmp.ne.s32.totalorder %s2510_s17, %s2506_s16 }
   0x6   : > { %p127_p1 = scmp.eq.s32.totalorder %s126_s23, 0  ;;  %p140_p2 = scmp.eq.s32.totalorder %s2602_s19, 1 }
   0x7   : > { %p145_p3 = scmp.ne.s32.totalorder %s2506_s16, %s2502_s15  ;;  %p146_p4 = scmp.eq.s32.totalorder %s2216_s20, 1 }
   0x8   : > { %s2617_s24 = scalar_select %p127_p1, %s2510_s17, %s129_s22  }
   0x9   : > { %p2619_p5 = por %p140_p2, %p139_p0  ;;  %p2623_p6 = por %p146_p4, %p145_p3 }
   0xa   : > { %p2219_p7 = scmp.ge.s32.totalorder %s2514_s18, 1  ;;  %p179_p8 = scmp.lt.s32.totalorder %s2514_s18, 3 }
   0xc   : > { %p180_p9 = pnand %p2219_p7, %p179_p8 }
   0xd   : > { %s3519_s27 = sand.u32 (!%p180_p9), 1, %s2506_s16   ;;  %p217_p10 = scmp.lt.s32.totalorder (!%p180_p9), %s2602_s19, 1  ;;  %v243_v0 = vlaneseq (!%p180_p9)  ;;  %v2665_v8 = vmov (!%p180_p9), 1e+10  }
   0xe   : > { %183 = sbr.rel (%p180_p9) target bundleno = 5221 (0x1465), region = 28  ;;  %s2220_s28 = sshll.u32 (!%p180_p9), %s3519_s27, 6 }
   0xf   : > { %v2634_v1 = vand.u32 (!%p180_p9), 127, %v243_v0 }
  0x15   : > { %s218_s29 = scalar_select %p217_p10, %s2602_s19, 1 }
  0x17   : > { %s2247_s30 = sshll.u32 %s218_s29, 6  ;;  %s2223_s5 = sshll.u32 %s218_s29, 2 }
  0x18   : > { %s2640_s8 = scalar_lea.vmem %s3514_s0, %s2247_s30  ;;  %s225_s11 = scalar_lea.vmem %s3515_s1, %s2223_s5 }
  0x19   : > { %s2224_s12 = sshll.u32 %s218_s29, 3  ;;  %v2645_v2 = vld [vmem:[%s225_s11] sm:$0x7]  ;;  %s2661_s29 = scalar_lea.vmem [#allocation6], %s2220_s28 }
  0x1a   : > { %s2650_s20 = scalar_lea.vmem %s3516_s2, %s2224_s12  ;;  %s2655_s27 = scalar_lea.vmem %s3517_s3, %s2224_s12  ;;  %v235_v3 = vmul.f32 %v2645_v2, %v2645_v2 }
  0x1b   : > { %s2663_s30 = smov 0   ;;  %s2667_s5 = smov 0  }
  0x1c   : > { %v237_v4 = vrot.slane %v235_v3, 1  ;;  %v240_v5 = vrot.slane %v235_v3, 2 }
  0x1e   : > { %v239_v6 = vadd.f32 %v237_v4, %v235_v3 }
  0x20   : > { %v2659_v7 = vadd.f32 %v240_v5, %v239_v6 }
  0x21 LB: >> { %v2528_v9 = vmov 17   ;;  %v2529_v10 = vmov 16   ;;  %s253_s28 = scalar_lea.vmem %s2640_s8, %s2518_s30  ;;  %s2530_s6 = smov 127   ;;  %v2531_v13 = vmov 18   ;;  %vm309_vm0 = vcmask 516096   ;;  %s2526_s5 = sphi %s2667_s5, %s250_s5   ;;  %v2522_v8 = vphi %v2665_v8, %v308_v8   ;;  %s2518_s30 = sphi %s2663_s30, %s2318_s30  }
  0x22   : >> { %2409 = vset.pattern.permute.xlu1 %v2528_v9  ;;  %2411 = vset.pattern.permute.xlu0 %v2529_v10  ;;  %v254_v11 = vld [vmem:[%s253_s28] sm:$0x1]  ;;  %s2532_s7 = smov 126   ;;  %s2533_s9 = smov 112   ;;  %vm256_vm3 = vcmask 122880   ;;  %vm263_vm4 = vcmask 16384  }
  0x23   : >> { %v292_v12 = vmul.f32 %v254_v11, %v254_v11  ;;  %271 = vperm.xlu1 %2409, %v254_v11   ;;  %s262_s10 = scalar_lea.vmem %s2650_s20, %s2526_s5  ;;  %s255_s11 = scalar_lea.vmem [#allocation2], %s2526_s5 }
  0x24   : >> { %257 = vst.msk [vmem:[%s255_s11] sm:$0x1] %vm256_vm3, %v254_v11  ;;  %s250_s5 = sadd.s32 1, %s2526_s5  }
  0x25   : >> { %294 = vrot.lane.b32.xlu0 %v292_v12, %s2530_s6  ;;  %p247_p11 = scmp.ge.s32.totalorder %s250_s5, 8  }
  0x26   : > { %v2534_v58 = vmov (%p247_p11), 0   ;;  %v2535_v59 = vmov (%p247_p11), 2   ;;  %s2536_s12 = smov (%p247_p11), 127   ;;  %v2537_v60 = vmov (%p247_p11), 1   ;;  %s2538_s13 = smov (%p247_p11), 126   ;;  %v2701_v4 = vshrl.u32 (%p247_p11), %v243_v0, 7 }
  0x27   : >> { %2410 = vset.pattern.permute.xlu1 %v2531_v13  ;;  %vm393_vm8 = vcmask (%p247_p11), 523264   ;;  %s2542_s14 = smov (%p247_p11), 113   ;;  %s2543_s22 = smov (%p247_p11), 112  }
  0x28   : >> { %281 = vperm.xlu1 %2410, %v254_v11   ;;  %v2704_v6 = vsub.s32 (%p247_p11), 0, %v2701_v4  ;;  %s2544_s23 = smov (%p247_p11), 119   ;;  %s2547_s5 = smov (%p247_p11), 20  }
  0x29   : >> { %298 = vrot.lane.b32.xlu0 %v292_v12, %s2532_s7  ;;  %s2548_s28 = smov (%p247_p11), 30   ;;  %s2549_s6 = smov (%p247_p11), 40  }
  0x2a   : > { %v349_v9 = vrot.slane (%p247_p11), %v2645_v2, %v2704_v6  ;;  %s2550_s7 = smov (%p247_p11), 50   ;;  %s2248_s11 = sshll.u32 (%p247_p11), %s2602_s19, 10 }
  0x2b   : > { %s3526_s19 = sand.u32 (%p247_p11), 1, %s2506_s16  }
  0x2c   : >> { %2412 = vset.pattern.permute.xlu1 %v2529_v10 }
  0x2d   : >> { %266 = vperm.xlu0 %2411, %v254_v11  }
  0x31   : > { %2415 = vset.pattern.permute.xlu0 (%p247_p11), %v2535_v59 }
  0x97   : >> { %v295_v14 = vpop.permute.xlu0 %294 }
  0x98   : >> { %v297_v15 = vadd.f32 %v295_v14, %v292_v12 }
  0x9b   : >> { %v299_v16 = vpop.permute.xlu0 %298 }
  0x9c   : >> { %v301_v17 = vadd.f32 %v299_v16, %v297_v15 }
  0x9e   : >> { %304 = vperm.xlu1 %2412, %v301_v17  }
  0xa2   : >> { %v272_v18 = vpop.permute.xlu1 %271  ;;  %2413 = vset.pattern.permute.xlu1 (%p247_p11), %v2534_v58 }
  0xa3   : >> { %v273_v19 = vrot.slane %v272_v18, 7 }
  0xa5   : >> { %v275_v21 = vmul.f32 %v273_v19, %v2645_v2 }
  0xa7   : >> { %v282_v20 = vpop.permute.xlu1 %281  ;;  %v277_v24 = vrot.slane %v275_v21, 1 }
  0xa8   : >> { %v283_v22 = vrot.slane %v282_v20, 6  ;;  %v375_v20 = vrot.slane (%p247_p11), %v2659_v7, %v2704_v6 }
  0xaa   : >> { %v285_v25 = vmul.f32 %v283_v22, %v2645_v2 }
  0xac   : >> { %v267_v23 = vpop.permute.xlu0 %266  ;;  %v287_v27 = vrot.slane %v285_v25, 2 }
  0xad   : >> { %v269_v26 = vmul.f32 %v267_v23, %v2645_v2 }
  0xaf   : >> { %v279_v28 = vadd.f32 %v277_v24, %v269_v26 }
  0xb1   : >> { %v289_v29 = vadd.f32 %v287_v27, %v279_v28 }
  0xb3   : >> { %v290_v30 = vmul.f32 2.0, %v289_v29 }
  0xb5   : >> { %v291_v31 = vsub.f32 %v2659_v7, %v290_v30 }
 0x11d   : >> { %v305_v32 = vpop.permute.xlu1 %304 }
 0x11e   : >> { %v307_v33 = vadd.f32 %v305_v32, %v291_v31 }
 0x120   : >> { %v308_v8 = vmin.f32 %v2522_v8, %v307_v33  }
 0x122   : >> { %v310_v34 = vsel %vm309_vm0, %v308_v8, -inf }
 0x123   : >> { %311 = vmax.xlane.f32.xlu1 %v310_v34 }
 0x134   : >> { %259 = vrot.lane.b32.xlu1 %v254_v11, %s2533_s9  ;;  %v367_v11 = vsub.s32 (%p247_p11), 2, %v2701_v4  ;;  %s2551_s9 = smov (%p247_p11), 60  }
 0x136   : > { %v368_v15 = vrot.slane (%p247_p11), %v2645_v2, %v367_v11 }
 0x1b0   : >> { %v312_v35 = vpop.xlane.xlu1 %311 }
 0x1b1   : >> { %vm313_vm1 = vcmp.eq.f32.partialorder %v308_v8, %v312_v35  ;;  %v357_v8 = vsub.s32 (%p247_p11), 1, %v2701_v4 }
 0x1b2   : >> { %v314_v36 = vsel %vm313_vm1, %v2634_v1, 64 }
 0x1b3   : >> { %v315_v37 = vsel %vm309_vm0, %v314_v36, 2147483647  ;;  %v358_v10 = vrot.slane (%p247_p11), %v2645_v2, %v357_v8 }
 0x1b4   : >> { %v317_v38 = vshra.s32 %v315_v37, 16  ;;  %v316_v40 = vand.u32 65535, %v315_v37  ;;  %v260_v44 = vpop.permute.xlu1 %259 }
 0x1b5   : >> { %264 = vst.msk [vmem:[%s262_s10] sm:$0x1] %vm263_vm4, %v260_v44  ;;  %s2552_s10 = smov (%p247_p11), 70  }
 0x1b6   : >> { %v319_v39 = vcvt.s32.f32 %v317_v38  ;;  %v318_v42 = vcvt.s32.f32 %v316_v40 }
 0x1b8   : >> { %320 = vmin.xlane.f32.xlu0 %v319_v39 }
 0x1bc   : > { %v2691_v56 = vld [vmem:[%s2650_s20] sm:$0xff] (%p247_p11) }
 0x1bd   : > { %v377_v57 = vmul.f32 (%p247_p11), %v2691_v56, %v2691_v56  ;;  %343 = vperm.xlu1 (%p247_p11), %2413, %v2691_v56  }
 0x1c1   : > { %2414 = vset.pattern.permute.xlu1 (%p247_p11), %v2537_v60 }
 0x1c2   : > { %352 = vperm.xlu1 (%p247_p11), %2414, %v2691_v56  }
 0x1c6   : > { %2416 = vset.pattern.permute.xlu1 (%p247_p11), %v2534_v58 }
 0x23c   : > { %v344_v5 = vpop.permute.xlu1 (%p247_p11), %343 }
 0x23d   : > { %v350_v13 = vmul.f32 (%p247_p11), %v349_v9, %v344_v5 }
 0x241   : > { %v353_v12 = vpop.permute.xlu1 (%p247_p11), %352 }
 0x242   : > { %v359_v14 = vmul.f32 (%p247_p11), %v358_v10, %v353_v12 }
 0x244   : > { %v360_v16 = vadd.f32 (%p247_p11), %v359_v14, %v350_v13 }
 0x245   : >> { %v321_v41 = vpop.xlane.xlu0 %320 }
 0x246   : >> { %vm322_vm2 = vcmp.eq.f32.partialorder %v319_v39, %v321_v41  ;;  %v327_v45 = vcvt.f32.s32 %v321_v41 }
 0x247   : >> { %v323_v43 = vsel %vm322_vm2, %v318_v42, inf }
 0x248   : >> { %324 = vmin.xlane.f32.xlu0 %v323_v43  ;;  %v328_v47 = vshll.u32 %v327_v45, 16 }
 0x25e   : > { %379 = vrot.lane.b32.xlu0 (%p247_p11), %v377_v57, %s2536_s12 }
 0x262   : > { %383 = vrot.lane.b32.xlu0 (%p247_p11), %v377_v57, %s2538_s13 }
 0x266   : > { %362 = vperm.xlu0 (%p247_p11), %2415, %v2691_v56  }
 0x26a   : > { %2417 = vset.pattern.permute.xlu0 (%p247_p11), %v2534_v58 }
 0x2d5   : >> { %v325_v46 = vpop.xlane.xlu0 %324 }
 0x2d6   : >> { %v326_v48 = vcvt.f32.s32 %v325_v46 }
 0x2d8   : >> { %v329_v49 = vadd.s32 %v328_v47, %v326_v48 }
 0x2d9   : > { %v380_v61 = vpop.permute.xlu0 (%p247_p11), %379 }
 0x2da   : >> { %v330_v50 = vrot.slane %v329_v49, 4  ;;  %v382_v62 = vadd.f32 (%p247_p11), %v380_v61, %v377_v57 }
 0x2dc   : >> { %vm331_vm5 = vcmp.lt.s32.totalorder %v329_v49, %v330_v50 }
 0x2dd   : >> { %v332_v51 = vsel %vm331_vm5, %v329_v49, %v330_v50  ;;  %v384_v63 = vpop.permute.xlu0 (%p247_p11), %383 }
 0x2de   : >> { %v333_v52 = vrot.slane %v332_v51, 2  ;;  %v386_v3 = vadd.f32 (%p247_p11), %v384_v63, %v382_v62 }
 0x2e0   : >> { %vm334_vm6 = vcmp.lt.s32.totalorder %v332_v51, %v333_v52  ;;  %389 = vperm.xlu1 (%p247_p11), %2416, %v386_v3  }
 0x2e1   : >> { %v335_v53 = vsel %vm334_vm6, %v332_v51, %v333_v52 }
 0x2e2   : >> { %v336_v54 = vrot.slane %v335_v53, 1 }
 0x2e4   : >> { %vm337_vm7 = vcmp.lt.s32.totalorder %v335_v53, %v336_v54 }
 0x2e5   : >> { %v338_v55 = vsel %vm337_vm7, %v335_v53, %v336_v54  ;;  %v363_v0 = vpop.permute.xlu0 (%p247_p11), %362 }
 0x2e6   : >> { %2317 = vpush %v338_v55  ;;  %v369_v17 = vmul.f32 (%p247_p11), %v368_v15, %v363_v0 }
 0x2e8   : > { %v370_v18 = vadd.f32 (%p247_p11), %v369_v17, %v360_v16 }
 0x2ea   : > { %v371_v19 = vmul.f32 (%p247_p11), 2.0, %v370_v18 }
 0x2ec   : > { %v376_v21 = vsub.f32 (%p247_p11), %v375_v20, %v371_v19 }
 0x311   : > { %249 = sbr.rel (!%p247_p11) target bundleno = 33 (0x21), region = 100 }
 0x317   : >> { %s2318_s30 = spop %2317  }
 0x318   : > { %s2545_s30 = smov 4  }
 0x35f   : > { %v390_v22 = vpop.permute.xlu1 %389 }
 0x360   : > { %v392_v23 = vadd.f32 %v390_v22, %v376_v21 }
 0x362   : > { %394 = vst.msk [vmem:[#allocation3] sm:$0xff] %vm393_vm8, %v392_v23 }
 0x369   : > { %v398_v24 = vld [vmem:[#allocation3] sm:$0xff] }
 0x36a   : > { %v399_v25 = vsel %vm393_vm8, %v398_v24, inf }
 0x36b   : > { %400 = vmin.xlane.f32.xlu1 %v399_v25 }
 0x3f8   : > { %v401_v26 = vpop.xlane.xlu1 %400 }
 0x3f9   : > { %vm402_vm9 = vcmp.eq.f32.partialorder %v398_v24, %v401_v26 }
 0x3fa   : > { %v403_v2 = vsel %vm402_vm9, %v2634_v1, 64 }
 0x3fb   : > { %v404_v27 = vsel %vm393_vm8, %v403_v2, 2147483647 }
 0x3fc   : > { %v406_v28 = vshra.s32 %v404_v27, 16  ;;  %v405_v7 = vand.u32 65535, %v404_v27 }
 0x3fe   : > { %v408_v29 = vcvt.s32.f32 %v406_v28  ;;  %v407_v31 = vcvt.s32.f32 %v405_v7 }
 0x400   : > { %409 = vmin.xlane.f32.xlu0 %v408_v29 }
 0x48d   : > { %v410_v30 = vpop.xlane.xlu0 %409 }
 0x48e   : > { %vm411_vm10 = vcmp.eq.f32.partialorder %v408_v29, %v410_v30  ;;  %v416_v33 = vcvt.f32.s32 %v410_v30 }
 0x48f   : > { %v412_v32 = vsel %vm411_vm10, %v407_v31, inf }
 0x490   : > { %413 = vmin.xlane.f32.xlu0 %v412_v32  ;;  %v417_v35 = vshll.u32 %v416_v33, 16 }
 0x51d   : > { %v414_v34 = vpop.xlane.xlu0 %413 }
 0x51e   : > { %v415_v36 = vcvt.f32.s32 %v414_v34 }
 0x520   : > { %v2718_v37 = vadd.s32 %v417_v35, %v415_v36 }
 0x522   : > { %vm419_vm11 = vcmp.eq.s32.totalorder %v2634_v1, %v2718_v37 }
 0x523   : > { %v420_v38 = vsel %vm419_vm11, 1e+10, %v398_v24 }
 0x524   : > { %v421_v39 = vsel %vm393_vm8, %v420_v38, inf }
 0x525   : > { %422 = vmin.xlane.f32.xlu1 %v421_v39 }
 0x5b2   : > { %v423_v40 = vpop.xlane.xlu1 %422 }
 0x5b3   : > { %vm424_vm12 = vcmp.eq.f32.partialorder %v420_v38, %v423_v40 }
 0x5b4   : > { %v425_v41 = vsel %vm424_vm12, %v2634_v1, 64 }
 0x5b5   : > { %v426_v42 = vsel %vm393_vm8, %v425_v41, 2147483647 }
 0x5b6   : > { %v428_v43 = vshra.s32 %v426_v42, 16  ;;  %v427_v45 = vand.u32 65535, %v426_v42 }
 0x5b8   : > { %v430_v44 = vcvt.s32.f32 %v428_v43  ;;  %v429_v47 = vcvt.s32.f32 %v427_v45 }
 0x5ba   : > { %431 = vmin.xlane.f32.xlu0 %v430_v44 }
 0x647   : > { %v432_v46 = vpop.xlane.xlu0 %431 }
 0x648   : > { %vm433_vm13 = vcmp.eq.f32.partialorder %v430_v44, %v432_v46  ;;  %v438_v49 = vcvt.f32.s32 %v432_v46 }
 0x649   : > { %v434_v48 = vsel %vm433_vm13, %v429_v47, inf }
 0x64a   : > { %435 = vmin.xlane.f32.xlu1 %v434_v48  ;;  %v439_v51 = vshll.u32 %v438_v49, 16 }
 0x6d7   : > { %v436_v50 = vpop.xlane.xlu1 %435 }
 0x6d8   : > { %v437_v52 = vcvt.f32.s32 %v436_v50 }
 0x6da   : > { %v2725_v53 = vadd.s32 %v439_v51, %v437_v52 }
 0x6dc   : > { %vm441_vm14 = vcmp.eq.s32.totalorder %v2634_v1, %v2725_v53 }
 0x6dd   : > { %v442_v54 = vsel %vm441_vm14, 1e+10, %v420_v38 }
 0x6de   : > { %v443_v55 = vsel %vm393_vm8, %v442_v54, inf }
 0x6df   : > { %444 = vmin.xlane.f32.xlu0 %v443_v55 }
 0x76c   : > { %v445_v57 = vpop.xlane.xlu0 %444 }
 0x76d   : > { %vm446_vm15 = vcmp.eq.f32.partialorder %v442_v54, %v445_v57 }
 0x76e   : > { %v447_v58 = vsel %vm446_vm15, %v2634_v1, 64 }
 0x76f   : > { %v448_v59 = vsel %vm393_vm8, %v447_v58, 2147483647 }
 0x770   : > { %v450_v60 = vshra.s32 %v448_v59, 16  ;;  %v449_v62 = vand.u32 65535, %v448_v59 }
 0x772   : > { %v452_v61 = vcvt.s32.f32 %v450_v60  ;;  %v451_v3 = vcvt.s32.f32 %v449_v62 }
 0x774   : > { %453 = vmin.xlane.f32.xlu1 %v452_v61 }
 0x801   : > { %v454_v63 = vpop.xlane.xlu1 %453 }
 0x802   : > { %vm455_vm0 = vcmp.eq.f32.partialorder %v452_v61, %v454_v63  ;;  %v460_v8 = vcvt.f32.s32 %v454_v63 }
 0x803   : > { %v456_v5 = vsel %vm455_vm0, %v451_v3, inf }
 0x804   : > { %457 = vmin.xlane.f32.xlu0 %v456_v5  ;;  %v461_v10 = vshll.u32 %v460_v8, 16 }
 0x891   : > { %v458_v9 = vpop.xlane.xlu0 %457 }
 0x892   : > { %v459_v11 = vcvt.f32.s32 %v458_v9 }
 0x894   : > { %v2732_v12 = vadd.s32 %v461_v10, %v459_v11 }
 0x896   : > { %vm463_vm1 = vcmp.eq.s32.totalorder %v2634_v1, %v2732_v12 }
 0x897   : > { %v464_v13 = vsel %vm463_vm1, 1e+10, %v442_v54 }
 0x898   : > { %v465_v14 = vsel %vm393_vm8, %v464_v13, inf }
 0x899   : > { %466 = vmin.xlane.f32.xlu1 %v465_v14 }
 0x926   : > { %v467_v15 = vpop.xlane.xlu1 %466 }
 0x927   : > { %vm468_vm2 = vcmp.eq.f32.partialorder %v464_v13, %v467_v15 }
 0x928   : > { %v469_v0 = vsel %vm468_vm2, %v2634_v1, 64 }
 0x929   : > { %v470_v16 = vsel %vm393_vm8, %v469_v0, 2147483647 }
 0x92a   : > { %v472_v17 = vshra.s32 %v470_v16, 16  ;;  %v471_v19 = vand.u32 65535, %v470_v16 }
 0x92c   : > { %v474_v18 = vcvt.s32.f32 %v472_v17  ;;  %v473_v21 = vcvt.s32.f32 %v471_v19 }
 0x92e   : > { %475 = vmin.xlane.f32.xlu0 %v474_v18 }
 0x9bb   : > { %v476_v20 = vpop.xlane.xlu0 %475 }
 0x9bc   : > { %vm477_vm3 = vcmp.eq.f32.partialorder %v474_v18, %v476_v20  ;;  %v482_v23 = vcvt.f32.s32 %v476_v20 }
 0x9bd   : > { %v478_v22 = vsel %vm477_vm3, %v473_v21, inf }
 0x9be   : > { %479 = vmin.xlane.f32.xlu1 %v478_v22  ;;  %v483_v25 = vshll.u32 %v482_v23, 16 }
 0xa4b   : > { %v480_v24 = vpop.xlane.xlu1 %479 }
 0xa4c   : > { %v481_v26 = vcvt.f32.s32 %v480_v24 }
 0xa4e   : > { %v2739_v2 = vadd.s32 %v483_v25, %v481_v26  ;;  %v624_v26 = vld [vmem:[%s2640_s8] sm:$0xff] }
 0xa50   : > { %vm485_vm4 = vcmp.eq.s32.totalorder %v2634_v1, %v2739_v2 }
 0xa51   : > { %v486_v27 = vsel %vm485_vm4, 1e+10, %v464_v13 }
 0xa52   : > { %v487_v28 = vsel %vm393_vm8, %v486_v27, inf }
 0xa53   : > { %488 = vmin.xlane.f32.xlu0 %v487_v28  ;;  %v626_v28 = vld [vmem:[%s2640_s8 + $0x10] sm:$0xff] }
 0xae0   : > { %v489_v29 = vpop.xlane.xlu0 %488 }
 0xae1   : > { %vm490_vm5 = vcmp.eq.f32.partialorder %v486_v27, %v489_v29 }
 0xae2   : > { %v491_v7 = vsel %vm490_vm5, %v2634_v1, 64 }
 0xae3   : > { %v492_v30 = vsel %vm393_vm8, %v491_v7, 2147483647  ;;  %v627_v7 = vld [vmem:[%s2640_s8 + $0x18] sm:$0xff] }
 0xae4   : > { %v494_v31 = vshra.s32 %v492_v30, 16  ;;  %v493_v33 = vand.u32 65535, %v492_v30  ;;  %v2297_v30 = vpack.c.bf16 %v627_v7, %v626_v28 }
 0xae6   : > { %v496_v32 = vcvt.s32.f32 %v494_v31  ;;  %v495_v35 = vcvt.s32.f32 %v493_v33  ;;  %v628_v31 = vld [vmem:[%s2640_s8 + $0x20] sm:$0xff] }
 0xae8   : > { %497 = vmin.xlane.f32.xlu1 %v496_v32 }
 0xb75   : > { %v498_v34 = vpop.xlane.xlu1 %497 }
 0xb76   : > { %vm499_vm6 = vcmp.eq.f32.partialorder %v496_v32, %v498_v34  ;;  %v504_v38 = vcvt.f32.s32 %v498_v34  ;;  %v629_v32 = vld [vmem:[%s2640_s8 + $0x28] sm:$0xff] }
 0xb77   : > { %v500_v36 = vsel %vm499_vm6, %v495_v35, inf  ;;  %v2301_v33 = vpack.c.bf16 %v629_v32, %v628_v31 }
 0xb78   : > { %501 = vmin.xlane.f32.xlu0 %v500_v36  ;;  %v505_v40 = vshll.u32 %v504_v38, 16 }
 0xc05   : > { %v502_v39 = vpop.xlane.xlu0 %501 }
 0xc06   : > { %v503_v41 = vcvt.f32.s32 %v502_v39  ;;  %v3520_v39 = vmov 0.0  }
 0xc08   : > { %v2746_v42 = vadd.s32 %v505_v40, %v503_v41  ;;  %v630_v41 = vld [vmem:[%s2640_s8 + $0x30] sm:$0xff] }
 0xc0a   : > { %vm507_vm7 = vcmp.eq.s32.totalorder %v2634_v1, %v2746_v42 }
 0xc0b   : > { %v508_v43 = vsel %vm507_vm7, 1e+10, %v486_v27  ;;  %v625_v27 = vld [vmem:[%s2640_s8 + $0x8] sm:$0xff] }
 0xc0c   : > { %v509_v44 = vsel %vm393_vm8, %v508_v43, inf  ;;  %v2293_v29 = vpack.c.bf16 %v625_v27, %v624_v26 }
 0xc0d   : > { %510 = vmin.xlane.f32.xlu1 %v509_v44 }
 0xc0e   : > { %2294 = vmatprep.subr.bf16.mxu0 %v2293_v29  ;;  %2309 = vmatprep.subr.bf16.mxu1 %v2293_v29 }
 0xc0f   : > { %2296 = vmatpush3.bf16.msra.mxu0 %v2293_v29  ;;  %2313 = vmatpush3.bf16.msra.mxu1 %v2293_v29 }
 0xc10   : > { %2298 = vmatprep.subr.bf16.mxu0 %v2297_v30  ;;  %2310 = vmatprep.subr.bf16.mxu1 %v2297_v30 }
 0xc13   : > { %2300 = vmatpush3.bf16.msra.mxu0 %v2297_v30  ;;  %2314 = vmatpush3.bf16.msra.mxu1 %v2297_v30 }
 0xc14   : > { %2302 = vmatprep.subr.bf16.mxu0 %v2301_v33  ;;  %2311 = vmatprep.subr.bf16.mxu1 %v2301_v33 }
 0xc17   : > { %2304 = vmatpush3.bf16.msra.mxu0 %v2301_v33  ;;  %2315 = vmatpush3.bf16.msra.mxu1 %v2301_v33 }
 0xc9a   : > { %v511_v45 = vpop.xlane.xlu1 %510 }
 0xc9b   : > { %vm512_vm9 = vcmp.eq.f32.partialorder %v508_v43, %v511_v45 }
 0xc9c   : > { %v513_v46 = vsel %vm512_vm9, %v2634_v1, 64 }
 0xc9d   : > { %v514_v47 = vsel %vm393_vm8, %v513_v46, 2147483647 }
 0xc9e   : > { %v516_v48 = vshra.s32 %v514_v47, 16  ;;  %v515_v50 = vand.u32 65535, %v514_v47 }
 0xca0   : > { %v518_v49 = vcvt.s32.f32 %v516_v48  ;;  %v517_v52 = vcvt.s32.f32 %v515_v50 }
 0xca2   : > { %519 = vmin.xlane.f32.xlu0 %v518_v49 }
 0xd2f   : > { %v520_v51 = vpop.xlane.xlu0 %519 }
 0xd30   : > { %vm521_vm10 = vcmp.eq.f32.partialorder %v518_v49, %v520_v51  ;;  %v526_v55 = vcvt.f32.s32 %v520_v51 }
 0xd31   : > { %v522_v54 = vsel %vm521_vm10, %v517_v52, inf }
 0xd32   : > { %523 = vmin.xlane.f32.xlu1 %v522_v54  ;;  %v527_v58 = vshll.u32 %v526_v55, 16 }
 0xdbf   : > { %v524_v57 = vpop.xlane.xlu1 %523 }
 0xdc0   : > { %v525_v59 = vcvt.f32.s32 %v524_v57 }
 0xdc2   : > { %v2753_v60 = vadd.s32 %v527_v58, %v525_v59 }
 0xdc4   : > { %vm529_vm11 = vcmp.eq.s32.totalorder %v2634_v1, %v2753_v60 }
 0xdc5   : > { %v530_v61 = vsel %vm529_vm11, 1e+10, %v508_v43  ;;  %v631_v43 = vld [vmem:[%s2640_s8 + $0x38] sm:$0xff]  ;;  %s2540_s8 = smov 16   ;;  %vm1723_vm11 = vcmask 1041408  }
 0xdc6   : > { %v531_v62 = vsel %vm393_vm8, %v530_v61, inf  ;;  %v2305_v44 = vpack.c.bf16 %v631_v43, %v630_v41 }
 0xdc7   : > { %532 = vmin.xlane.f32.xlu0 %v531_v62  ;;  %v2541_v62 = vmov 1966171168  }
 0xdc8   : > { %2306 = vmatprep.subr.bf16.mxu0 %v2305_v44  ;;  %2312 = vmatprep.subr.bf16.mxu1 %v2305_v44 }
 0xdc9   : > { %2308 = vmatpush3.bf16.msra.mxu0 %v2305_v44  ;;  %2316 = vmatpush3.bf16.msra.mxu1 %v2305_v44 }
 0xe54   : > { %v533_v63 = vpop.xlane.xlu0 %532 }
 0xe55   : > { %vm534_vm12 = vcmp.eq.f32.partialorder %v530_v61, %v533_v63  ;;  %v805_v63 = vunpack.c.l.s4 %v2541_v62 }
 0xe56   : > { %v535_v3 = vsel %vm534_vm12, %v2634_v1, 64  ;;  %vm1732_vm12 = vcmask 1042432  }
 0xe57   : > { %v536_v5 = vsel %vm393_vm8, %v535_v3, 2147483647  ;;  %v806_v3 = vunpack.c.0.s8 %v805_v63 }
 0xe58   : > { %v538_v8 = vshra.s32 %v536_v5, 16  ;;  %v537_v10 = vand.u32 65535, %v536_v5 }
 0xe59   : > { %v2812_v5 = vsub.s32 %v806_v3, %v2701_v4 }
 0xe5a   : > { %v540_v9 = vcvt.s32.f32 %v538_v8  ;;  %v539_v13 = vcvt.s32.f32 %v537_v10 }
 0xe5c   : > { %541 = vmin.xlane.f32.xlu1 %v540_v9 }
 0xee9   : > { %v542_v11 = vpop.xlane.xlu1 %541 }
 0xeea   : > { %vm543_vm13 = vcmp.eq.f32.partialorder %v540_v9, %v542_v11  ;;  %v548_v15 = vcvt.f32.s32 %v542_v11 }
 0xeeb   : > { %v544_v14 = vsel %vm543_vm13, %v539_v13, inf  ;;  %vm1741_vm13 = vcmask 1043456  }
 0xeec   : > { %545 = vmin.xlane.f32.xlu0 %v544_v14  ;;  %v549_v16 = vshll.u32 %v548_v15, 16 }
 0xf79   : > { %v546_v0 = vpop.xlane.xlu0 %545 }
 0xf7a   : > { %v547_v17 = vcvt.f32.s32 %v546_v0 }
 0xf7c   : > { %v550_v18 = vadd.s32 %v549_v16, %v547_v17 }
 0xf7e   : > { %vm551_vm14 = vcmp.eq.s32.totalorder %v2634_v1, %v550_v18 }
 0xf7f   : > { %v2761_v19 = vsel %vm551_vm14, 1e+10, %v530_v61  ;;  %vm1750_vm14 = vcmask 1044480  }
 0xf80   : > { %v553_v20 = vsel %vm393_vm8, %v2761_v19, inf }
 0xf81   : > { %554 = vmin.xlane.f32.xlu1 %v553_v20 }
0x100e   : > { %v555_v21 = vpop.xlane.xlu1 %554 }
0x100f   : > { %vm556_vm15 = vcmp.eq.f32.partialorder %v2761_v19, %v555_v21 }
0x1010   : > { %v557_v22 = vsel %vm556_vm15, %v2634_v1, 64  ;;  %vm1759_vm15 = vcmask 1045504  }
0x1011   : > { %v558_v23 = vsel %vm393_vm8, %v557_v22, 2147483647 }
0x1012   : > { %v560_v24 = vshra.s32 %v558_v23, 16 }
0x1014   : > { %v562_v25 = vcvt.s32.f32 %v560_v24 }
0x1016   : > { %563 = vmin.xlane.f32.xlu0 %v562_v25 }
0x102c   : > { %577 = vperm.xlu0 %2417, %v2718_v37   ;;  %v559_v37 = vand.u32 65535, %v558_v23 }
0x102e   : > { %v561_v35 = vcvt.s32.f32 %v559_v37 }
0x10a3   : > { %v564_v34 = vpop.xlane.xlu0 %563 }
0x10a4   : > { %vm565_vm0 = vcmp.eq.f32.partialorder %v562_v25, %v564_v34  ;;  %v570_v45 = vcvt.f32.s32 %v564_v34 }
0x10a5   : > { %v566_v36 = vsel %vm565_vm0, %v561_v35, inf }
0x10a6   : > { %567 = vmin.xlane.f32.xlu1 %v566_v36  ;;  %v571_v47 = vshll.u32 %v570_v45, 16 }
0x10ab   : > { %v578_v38 = vpop.permute.xlu0 %577 }
0x10ac   : > { %vm600_vm1 = vcmp.eq.s32.totalorder %v2634_v1, %v578_v38 }
0x10ad   : > { %v2226_v40 = vsel %vm600_vm1, 1.0, %v3520_v39 }
0x10ae   : > { %2281 = vmatprep.mubr.msk.f32.mxu0 %vm393_vm8, %v2226_v40 }
0x10b7   : > { %580 = vperm.xlu1 %2416, %v2725_v53  }
0x10bb   : > { %583 = vperm.xlu1 %2416, %v2732_v12  }
0x10bf   : > { %586 = vperm.xlu1 %2416, %v2739_v2  }
0x10c3   : > { %589 = vperm.xlu1 %2416, %v2746_v42  }
0x10c7   : > { %592 = vperm.xlu1 %2416, %v2753_v60  }
0x10cb   : > { %595 = vperm.xlu1 %2416, %v550_v18  }
0x1133   : > { %v568_v46 = vpop.xlane.xlu1 %567 }
0x1134   : > { %v569_v48 = vcvt.f32.s32 %v568_v46 }
0x1136   : > { %v572_v49 = vadd.s32 %v571_v47, %v569_v48 }
0x1137   : > { %v581_v50 = vpop.permute.xlu1 %580 }
0x1138   : > { %vm573_vm2 = vcmp.eq.s32.totalorder %v2634_v1, %v572_v49  ;;  %vm601_vm3 = vcmp.eq.s32.totalorder %v2634_v1, %v581_v50  ;;  %598 = vperm.xlu1 %2416, %v572_v49  }
0x1139   : > { %v574_v53 = vsel %vm573_vm2, 1e+10, %v2761_v19  ;;  %v2227_v12 = vsel %vm601_vm3, 1.0, %v3520_v39  ;;  %vm1768_vm3 = vcmask 1046528  }
0x113a   : > { %575 = vst.msk [vmem:[#allocation3] sm:$0xff] %vm393_vm8, %v574_v53  ;;  %2282 = vmatmul.mubr.msk.f32.vlgmr.msra.gmra.mrb[0].mxu0 %vm393_vm8, %v2227_v12 }
0x113b   : > { %v584_v2 = vpop.permute.xlu1 %583 }
0x113c   : > { %vm602_vm4 = vcmp.eq.s32.totalorder %v2634_v1, %v584_v2  ;;  %761 = vrot.lane.b32.xlu1 %v2691_v56, %s2540_s8 }
0x113d   : > { %v2228_v42 = vsel %vm602_vm4, 1.0, %v3520_v39  ;;  %vm1777_vm4 = vcmask 130048  }
0x113e   : > { %2284 = vmatprep.mubr.msk.f32.mxu0 %vm393_vm8, %v2228_v42 }
0x113f   : > { %v587_v51 = vpop.permute.xlu1 %586 }
0x1140   : > { %vm603_vm5 = vcmp.eq.s32.totalorder %v2634_v1, %v587_v51 }
0x1141   : > { %v2229_v52 = vsel %vm603_vm5, 1.0, %v3520_v39 }
0x1142   : > { %2285 = vmatmul.mubr.msk.f32.gmra.mrb[2].mxu0 %vm393_vm8, %v2229_v52 }
0x1143   : > { %v590_v54 = vpop.permute.xlu1 %589 }
0x1144   : > { %vm604_vm6 = vcmp.eq.s32.totalorder %v2634_v1, %v590_v54 }
0x1145   : > { %v2230_v55 = vsel %vm604_vm6, 1.0, %v3520_v39 }
0x1146   : > { %2287 = vmatprep.mubr.msk.f32.mxu1 %vm393_vm8, %v2230_v55 }
0x1147   : > { %v593_v57 = vpop.permute.xlu1 %592 }
0x1148   : > { %vm605_vm7 = vcmp.eq.s32.totalorder %v2634_v1, %v593_v57 }
0x1149   : > { %v2231_v56 = vsel %vm605_vm7, 1.0, %v3520_v39 }
0x114a   : > { %2288 = vmatmul.mubr.msk.f32.vlgmr.msra.gmra.mrb[0].mxu1 %vm393_vm8, %v2231_v56 }
0x114b   : > { %v596_v58 = vpop.permute.xlu1 %595 }
0x114c   : > { %vm606_vm9 = vcmp.eq.s32.totalorder %v2634_v1, %v596_v58 }
0x114d   : > { %v2232_v59 = vsel %vm606_vm9, 1.0, %v3520_v39 }
0x114e   : > { %2290 = vmatprep.mubr.msk.f32.mxu1 %vm393_vm8, %v2232_v59 }
0x11b7   : > { %v599_v60 = vpop.permute.xlu1 %598 }
0x11b8   : > { %vm607_vm10 = vcmp.eq.s32.totalorder %v2634_v1, %v599_v60 }
0x11b9   : > { %v2233_v61 = vsel %vm607_vm10, 1.0, %v3520_v39 }
0x11ba   : > { %2291 = vmatmul.mubr.msk.f32.gmra.mrb[2].mxu1 %vm393_vm8, %v2233_v61  ;;  %vm1714_vm8 = vcmask 1040384  }
0x11bb   : > { %v2814_v8 = vpop.permute.xlu1 %761 }
0x120d   : > { %v2816_v9 = vpop.f32.mrb[0].mxu0 }
0x120e   : > { %v893_v10 = vcombine.high %v2816_v9, %v2816_v9  ;;  %v900_v1 = vrot.slane %v2816_v9, %v2812_v5  ;;  %v2822_v11 = vpop.f32.mrb[1].mxu0  ;;  %v2826_v13 = vsub.f32 %v2816_v9, %v2814_v8 }
0x120f   : > { %v2830_v4 = vsub.f32 %v2822_v11, %v2814_v8  ;;  %v803_v14 = vcombine.high %v2822_v11, %v2822_v11  ;;  %v810_v15 = vrot.slane %v2822_v11, %v2812_v5 }
0x1210   : > { %v907_v0 = vrot.slane %v893_v10, %v2812_v5  ;;  %v908_v16 = vcombine.high %v900_v1, %v900_v1  ;;  %v916_v17 = vrot.slane %v900_v1, %v2812_v5  ;;  %v2840_v18 = vmul.f32 %v2826_v13, %v2826_v13 }
0x1211   : > { %v817_v19 = vrot.slane %v803_v14, %v2812_v5  ;;  %v818_v20 = vcombine.high %v810_v15, %v810_v15  ;;  %v826_v21 = vrot.slane %v810_v15, %v2812_v5  ;;  %v2846_v22 = vmul.f32 %v2830_v4, %v2830_v4 }
0x1212   : > { %v909_v23 = vcombine.high %v907_v0, %v907_v0  ;;  %v923_v24 = vrot.slane %v907_v0, %v2812_v5  ;;  %v930_v25 = vrot.slane %v908_v16, %v2812_v5  ;;  %v938_v26 = vcombine.high %v916_v17, %v916_v17  ;;  %863 = vrot.lane.b32.xlu1 %v2840_v18, %s2536_s12 }
0x1213   : > { %v1437_v27 = vrot.slane %v916_v17, %v2704_v6  ;;  %v819_v28 = vcombine.high %v817_v19, %v817_v19  ;;  %v833_v29 = vrot.slane %v817_v19, %v2812_v5  ;;  %v840_v7 = vrot.slane %v818_v20, %v2812_v5  ;;  %767 = vrot.lane.b32.xlu0 %v2846_v22, %s2536_s12 }
0x1214   : > { %v937_v30 = vrot.slane %v909_v23, %v2812_v5  ;;  %v939_v31 = vcombine.high %v923_v24, %v923_v24  ;;  %v940_v32 = vcombine.high %v930_v25, %v930_v25  ;;  %v1441_v33 = vrot.slane %v930_v25, %v2704_v6 }
0x1215   : > { %v1445_v37 = vrot.slane %v938_v26, %v2704_v6  ;;  %v1453_v34 = vrot.slane %v923_v24, %v2704_v6  ;;  %v847_v35 = vrot.slane %v819_v28, %v2812_v5  ;;  %v848_v36 = vcombine.high %v826_v21, %v826_v21  ;;  %v2862_v38 = vpop.f32.mrb[2].mxu0 }
0x1216   : > { %v941_v40 = vcombine.high %v937_v30, %v937_v30  ;;  %v1449_v41 = vrot.slane %v940_v32, %v2704_v6  ;;  %v1457_v43 = vrot.slane %v937_v30, %v2704_v6  ;;  %v1461_v44 = vrot.slane %v939_v31, %v2704_v6  ;;  %v2867_v45 = vpop.f32.mrb[3].mxu0  ;;  %867 = vrot.lane.b32.xlu1 %v2840_v18, %s2538_s13 }
0x1217   : > { %v849_v46 = vcombine.high %v833_v29, %v833_v29  ;;  %v850_v47 = vcombine.high %v840_v7, %v840_v7  ;;  %v851_v48 = vcombine.high %v847_v35, %v847_v35  ;;  %v1715_v49 = vsel %vm1714_vm8, %v826_v21, %v1437_v27  ;;  %771 = vrot.lane.b32.xlu0 %v2846_v22, %s2538_s13 }
0x1218   : > { %v1465_v50 = vrot.slane %v941_v40, %v2704_v6  ;;  %v1716_v53 = vsel %vm1714_vm8, %v840_v7, %v1441_v33  ;;  %v1717_v12 = vsel %vm1714_vm8, %v848_v36, %v1445_v37  ;;  %v1719_v2 = vsel %vm1714_vm8, %v833_v29, %v1453_v34 }
0x1219   : > { %v1718_v42 = vsel %vm1714_vm8, %v850_v47, %v1449_v41  ;;  %v1720_v51 = vsel %vm1714_vm8, %v847_v35, %v1457_v43  ;;  %v1721_v52 = vsel %vm1714_vm8, %v849_v46, %v1461_v44  ;;  %v1057_v55 = vcombine.high %v2862_v38, %v2862_v38 }
0x121a   : > { %v2882_v54 = vsel %vm1714_vm8, %v851_v48, %v1465_v50  ;;  %v1064_v57 = vrot.slane %v2862_v38, %v2812_v5  ;;  %v2890_v56 = vsub.f32 %v2867_v45, %v2814_v8  ;;  %v2894_v58 = vsub.f32 %v2862_v38, %v2814_v8 }
0x121b   : > { %v975_v59 = vcombine.high %v2867_v45, %v2867_v45  ;;  %v982_v60 = vrot.slane %v2867_v45, %v2812_v5  ;;  %v1071_v61 = vrot.slane %v1057_v55, %v2812_v5 }
0x121c   : > { %v1072_v62 = vcombine.high %v1064_v57, %v1064_v57  ;;  %v2902_v63 = vrot.slane %v1064_v57, %v2812_v5  ;;  %v2906_v3 = vmul.f32 %v2890_v56, %v2890_v56  ;;  %v2931_v27 = vmul.f32 %v2894_v58, %v2894_v58 }
0x121d   : > { %v989_v10 = vrot.slane %v975_v59, %v2812_v5  ;;  %v990_v1 = vcombine.high %v982_v60, %v982_v60  ;;  %v998_v14 = vrot.slane %v982_v60, %v2812_v5  ;;  %v2910_v15 = vpop.f32.mrb[0].mxu1  ;;  %v1073_v0 = vcombine.high %v1071_v61, %v1071_v61 }
0x121e   : > { %v2913_v16 = vrot.slane %v1071_v61, %v2812_v5  ;;  %v1094_v17 = vrot.slane %v1072_v62, %v2812_v5  ;;  %v1102_v19 = vcombine.high %v2902_v63, %v2902_v63  ;;  %949 = vrot.lane.b32.xlu1 %v2906_v3, %s2538_s13  ;;  %v2920_v20 = vpop.f32.mrb[1].mxu1  ;;  %945 = vrot.lane.b32.xlu0 %v2906_v3, %s2536_s12 }
0x121f   : > { %v991_v21 = vcombine.high %v989_v10, %v989_v10  ;;  %v1005_v23 = vrot.slane %v989_v10, %v2812_v5  ;;  %v1012_v24 = vrot.slane %v990_v1, %v2812_v5  ;;  %v2927_v25 = vrot.slane %v1073_v0, %v2812_v5 }
0x1220   : > { %v1104_v26 = vcombine.high %v1094_v17, %v1094_v17  ;;  %v1103_v28 = vcombine.high %v2913_v16, %v2913_v16  ;;  %v1517_v29 = vrot.slane %v2902_v63, %v2704_v6  ;;  %v1020_v30 = vcombine.high %v998_v14, %v998_v14 }
0x1221   : > { %v1019_v7 = vrot.slane %v991_v21, %v2812_v5  ;;  %v1105_v31 = vcombine.high %v2927_v25, %v2927_v25  ;;  %v1521_v32 = vrot.slane %v1094_v17, %v2704_v6  ;;  %v2942_v33 = vrot.slane %v1102_v19, %v2704_v6 }
0x1222   : > { %1031 = vrot.lane.b32.xlu1 %v2931_v27, %s2538_s13  ;;  %v2949_v34 = vrot.slane %v1104_v26, %v2704_v6  ;;  %v1021_v35 = vcombine.high %v1005_v23, %v1005_v23  ;;  %v1022_v36 = vcombine.high %v1012_v24, %v1012_v24  ;;  %v1477_v40 = vrot.slane %v998_v14, %v2704_v6 }
0x1223   : > { %1027 = vrot.lane.b32.xlu0 %v2931_v27, %s2536_s12  ;;  %v1537_v41 = vrot.slane %v2927_v25, %v2704_v6  ;;  %v1481_v43 = vrot.slane %v1012_v24, %v2704_v6  ;;  %v1485_v44 = vrot.slane %v1020_v30, %v2704_v6  ;;  %v1493_v46 = vrot.slane %v1005_v23, %v2704_v6 }
0x1224   : > { %v2960_v47 = vrot.slane %v1103_v28, %v2704_v6  ;;  %v1489_v48 = vrot.slane %v1022_v36, %v2704_v6  ;;  %v1497_v50 = vrot.slane %v1019_v7, %v2704_v6  ;;  %v1501_v55 = vrot.slane %v1021_v35, %v2704_v6 }
0x1225   : > { %v2966_v57 = vsel %vm1723_vm11, %v1715_v49, %v1477_v40  ;;  %v1725_v59 = vsel %vm1723_vm11, %v1716_v53, %v1481_v43  ;;  %v2970_v60 = vsel %vm1723_vm11, %v1717_v12, %v1485_v44  ;;  %v2973_v61 = vsel %vm1723_vm11, %v1719_v2, %v1493_v46 }
0x1226   : > { %v1023_v62 = vcombine.high %v1019_v7, %v1019_v7  ;;  %v1727_v10 = vsel %vm1723_vm11, %v1718_v42, %v1489_v48  ;;  %v2977_v1 = vsel %vm1723_vm11, %v1720_v51, %v1497_v50  ;;  %v2980_v14 = vsel %vm1723_vm11, %v1721_v52, %v1501_v55 }
0x1227   : > { %v1221_v49 = vcombine.high %v2910_v15, %v2910_v15  ;;  %v1228_v53 = vrot.slane %v2910_v15, %v2812_v5  ;;  %v2988_v12 = vsub.f32 %v2920_v20, %v2814_v8  ;;  %v1139_v2 = vcombine.high %v2920_v20, %v2920_v20 }
0x1228   : > { %v2993_v42 = vrot.slane %v1105_v31, %v2704_v6  ;;  %v2997_v51 = vsub.f32 %v2910_v15, %v2814_v8  ;;  %v1146_v52 = vrot.slane %v2920_v20, %v2812_v5  ;;  %v1734_v0 = vsel %vm1732_vm12, %v1725_v59, %v1521_v32 }
0x1229   : > { %v1235_v17 = vrot.slane %v1221_v49, %v2812_v5  ;;  %v1236_v19 = vcombine.high %v1228_v53, %v1228_v53  ;;  %v1244_v21 = vrot.slane %v1228_v53, %v2812_v5  ;;  %v1153_v23 = vrot.slane %v1139_v2, %v2812_v5 }
0x122a   : > { %v1505_v24 = vrot.slane %v1023_v62, %v2704_v6  ;;  %v1154_v26 = vcombine.high %v1146_v52, %v1146_v52  ;;  %v1162_v28 = vrot.slane %v1146_v52, %v2812_v5  ;;  %v3009_v7 = vmul.f32 %v2988_v12, %v2988_v12 }
0x122b   : > { %v1237_v30 = vcombine.high %v1235_v17, %v1235_v17  ;;  %v1251_v31 = vrot.slane %v1235_v17, %v2812_v5  ;;  %v1258_v32 = vrot.slane %v1236_v19, %v2812_v5  ;;  %v1266_v35 = vcombine.high %v1244_v21, %v1244_v21 }
0x122c   : > { %v1155_v36 = vcombine.high %v1153_v23, %v1153_v23  ;;  %v1169_v40 = vrot.slane %v1153_v23, %v2812_v5  ;;  %v1176_v43 = vrot.slane %v1154_v26, %v2812_v5  ;;  %1113 = vrot.lane.b32.xlu1 %v3009_v7, %s2538_s13  ;;  %v3019_v44 = vmul.f32 %v2997_v51, %v2997_v51 }
0x122d   : > { %v1265_v46 = vrot.slane %v1237_v30, %v2812_v5  ;;  %v1267_v48 = vcombine.high %v1251_v31, %v1251_v31  ;;  %v1268_v50 = vcombine.high %v1258_v32, %v1258_v32  ;;  %v1597_v55 = vrot.slane %v1244_v21, %v2704_v6  ;;  %1109 = vrot.lane.b32.xlu0 %v3009_v7, %s2536_s12 }
0x122e   : > { %v1601_v59 = vrot.slane %v1258_v32, %v2704_v6  ;;  %v1605_v62 = vrot.slane %v1266_v35, %v2704_v6  ;;  %v1183_v49 = vrot.slane %v1155_v36, %v2812_v5  ;;  %v1184_v53 = vcombine.high %v1162_v28, %v1162_v28 }
0x122f   : > { %v1269_v2 = vcombine.high %v1265_v46, %v1265_v46  ;;  %v1609_v52 = vrot.slane %v1268_v50, %v2704_v6  ;;  %v1613_v17 = vrot.slane %v1251_v31, %v2704_v6  ;;  %v1617_v19 = vrot.slane %v1265_v46, %v2704_v6 }
0x1230   : > { %v1185_v23 = vcombine.high %v1169_v40, %v1169_v40  ;;  %v1186_v26 = vcombine.high %v1176_v43, %v1176_v43  ;;  %v1187_v21 = vcombine.high %v1183_v49, %v1183_v49  ;;  %v1557_v30 = vrot.slane %v1162_v28, %v2704_v6  ;;  %1195 = vrot.lane.b32.xlu1 %v3019_v44, %s2538_s13 }
0x1231   : > { %v1621_v32 = vrot.slane %v1267_v48, %v2704_v6  ;;  %v1561_v35 = vrot.slane %v1176_v43, %v2704_v6  ;;  %v1565_v36 = vrot.slane %v1184_v53, %v2704_v6  ;;  %v1573_v50 = vrot.slane %v1169_v40, %v2704_v6  ;;  %1191 = vrot.lane.b32.xlu0 %v3019_v44, %s2536_s12 }
0x1232   : > { %v1569_v31 = vrot.slane %v1186_v26, %v2704_v6  ;;  %v1577_v46 = vrot.slane %v1183_v49, %v2704_v6  ;;  %v1581_v28 = vrot.slane %v1185_v23, %v2704_v6  ;;  %v1585_v39 = vrot.slane %v1187_v21, %v2704_v6 }
0x1233   : > { %v1743_v37 = vsel %vm1741_vm13, %v1734_v0, %v1561_v35  ;;  %v1733_v43 = vsel %vm1732_vm12, %v2966_v57, %v1517_v29  ;;  %v1736_v40 = vsel %vm1732_vm12, %v1727_v10, %v2949_v34  ;;  %v1735_v48 = vsel %vm1732_vm12, %v2970_v60, %v2942_v33 }
0x1234   : > { %v3056_v49 = vsel %vm1750_vm14, %v1743_v37, %v1601_v59  ;;  %v1742_v53 = vsel %vm1741_vm13, %v1733_v43, %v1557_v30  ;;  %v1745_v0 = vsel %vm1741_vm13, %v1736_v40, %v1569_v31  ;;  %v1744_v23 = vsel %vm1741_vm13, %v1735_v48, %v1565_v36 }
0x1235   : > { %v3062_v63 = vsel %vm1750_vm14, %v1742_v53, %v1597_v55  ;;  %v3065_v29 = vsel %vm1750_vm14, %v1745_v0, %v1609_v52  ;;  %v3068_v34 = vsel %vm1750_vm14, %v1744_v23, %v1605_v62  ;;  %v1738_v33 = vsel %vm1732_vm12, %v2977_v1, %v1537_v41 }
0x1236   : > { %v1747_v37 = vsel %vm1741_vm13, %v1738_v33, %v1577_v46  ;;  %v3524_v57 = vrot.slane %v2913_v16, %v2704_v6  ;;  %v1625_v10 = vrot.slane %v1269_v2, %v2704_v6  ;;  %v1731_v55 = vsel %vm1723_vm11, %v2882_v54, %v1505_v24 }
0x1237   : > { %v3085_v59 = vsel %vm1750_vm14, %v1747_v37, %v1617_v19  ;;  %v1740_v41 = vsel %vm1732_vm12, %v1731_v55, %v2993_v42  ;;  %v1739_v16 = vsel %vm1732_vm12, %v2980_v14, %v2960_v47 }
0x1238   : > { %v1737_v60 = vsel %vm1732_vm12, %v2973_v61, %v3524_v57  ;;  %v1749_v61 = vsel %vm1741_vm13, %v1740_v41, %v1585_v39  ;;  %v1748_v62 = vsel %vm1741_vm13, %v1739_v16, %v1581_v28 }
0x1239   : > { %v1746_v25 = vsel %vm1741_vm13, %v1737_v60, %v1573_v50  ;;  %v3099_v54 = vsel %vm1750_vm14, %v1749_v61, %v1625_v10  ;;  %v3102_v24 = vsel %vm1750_vm14, %v1748_v62, %v1621_v32 }
0x123a   : > { %v3094_v1 = vsel %vm1750_vm14, %v1746_v25, %v1613_v17  ;;  %vm797_vm14 = vcmask 7168  }
0x1284   : > { %v864_v2 = vpop.permute.xlu1 %863 }
0x1285   : > { %v768_v52 = vpop.permute.xlu0 %767  ;;  %v866_v42 = vadd.f32 %v864_v2, %v2840_v18 }
0x1286   : > { %v770_v19 = vadd.f32 %v768_v52, %v2846_v22 }
0x1288   : > { %v868_v47 = vpop.permute.xlu1 %867 }
0x1289   : > { %v3106_v14 = vadd.f32 %v868_v47, %v866_v42  ;;  %v772_v17 = vpop.permute.xlu0 %771 }
0x128a   : > { %v3108_v26 = vadd.f32 %v772_v17, %v770_v19 }
0x128b   : > { %2419 = vrsqrt.f32 %v3106_v14  ;;  %vm873_vm0 = vcmp.eq.f32.partialorder %v3106_v14, inf  ;;  %vm875_vm2 = vcmp.eq.f32.partialorder %v3106_v14, 0.0  ;;  %v876_v23 = vand.u32 2147483648, %v3106_v14 }
0x128c   : > { %2421 = vrsqrt.f32 %v3108_v26  ;;  %vm777_vm1 = vcmp.eq.f32.partialorder %v3108_v26, inf  ;;  %vm779_vm5 = vcmp.eq.f32.partialorder %v3108_v26, 0.0 }
0x128d   : > { %v3112_v39 = vpop.f32.mrb[2].mxu1 }
0x128e   : > { %v1385_v21 = vcombine.high %v3112_v39, %v3112_v39  ;;  %v1392_v18 = vrot.slane %v3112_v39, %v2812_v5  ;;  %v3118_v30 = vpop.f32.mrb[3].mxu1  ;;  %v3130_v36 = vsub.f32 %v3112_v39, %v2814_v8 }
0x128f   : > { %v3122_v22 = vsub.f32 %v3118_v30, %v2814_v8  ;;  %v1303_v32 = vcombine.high %v3118_v30, %v3118_v30  ;;  %v1310_v35 = vrot.slane %v3118_v30, %v2812_v5 }
0x1290   : > { %v3133_v50 = vrot.slane %v1385_v21, %v2812_v5  ;;  %v1400_v31 = vcombine.high %v1392_v18, %v1392_v18  ;;  %v950_v46 = vpop.permute.xlu1 %949  ;;  %v946_v28 = vpop.permute.xlu0 %945  ;;  %v1408_v8 = vrot.slane %v1392_v18, %v2812_v5  ;;  %v3160_v55 = vmul.f32 %v3130_v36, %v3130_v36 }
0x1291   : > { %v1317_v43 = vrot.slane %v1303_v32, %v2812_v5  ;;  %v1318_v40 = vcombine.high %v1310_v35, %v1310_v35  ;;  %v1326_v48 = vrot.slane %v1310_v35, %v2812_v5  ;;  %v3139_v53 = vmul.f32 %v3122_v22, %v3122_v22 }
0x1292   : > { %v3144_v0 = vrot.slane %v1400_v31, %v2812_v5  ;;  %v948_v33 = vadd.f32 %v946_v28, %v2906_v3  ;;  %v1401_v10 = vcombine.high %v3133_v50, %v3133_v50  ;;  %v780_v3 = vand.u32 2147483648, %v3108_v26 }
0x1293   : > { %v1319_v37 = vcombine.high %v1317_v43, %v1317_v43  ;;  %v1333_v57 = vrot.slane %v1317_v43, %v2812_v5  ;;  %v1340_v60 = vrot.slane %v1318_v40, %v2812_v5  ;;  %1277 = vrot.lane.b32.xlu1 %v3139_v53, %s2538_s13  ;;  %1273 = vrot.lane.b32.xlu0 %v3139_v53, %s2536_s12 }
0x1294   : > { %v3166_v41 = vrot.slane %v3133_v50, %v2812_v5  ;;  %v3168_v16 = vadd.f32 %v950_v46, %v948_v33  ;;  %v1348_v61 = vcombine.high %v1326_v48, %v1326_v48  ;;  %v1430_v42 = vcombine.high %v1408_v8, %v1408_v8  ;;  %v1032_v35 = vpop.permute.xlu1 %1031 }
0x1295   : > { %v2420_v25 = vpop.eup %2419  ;;  %v1350_v62 = vcombine.high %v1340_v60, %v1340_v60  ;;  %v1028_v2 = vpop.permute.xlu0 %1027  ;;  %v1347_v19 = vrot.slane %v1319_v37, %v2812_v5  ;;  %v1641_v47 = vrot.slane %v1340_v60, %v2704_v6  ;;  %v1349_v21 = vcombine.high %v1333_v57, %v1333_v57 }
0x1296   : > { %v2422_v52 = vpop.eup %2421  ;;  %v1030_v17 = vadd.f32 %v1028_v2, %v2931_v27  ;;  %v1637_v18 = vrot.slane %v1326_v48, %v2704_v6  ;;  %v1681_v50 = vrot.slane %v3144_v0, %v2704_v6  ;;  %v872_v27 = vmul.f32 %v2420_v25, %v3106_v14 }
0x1297   : > { %v1649_v32 = vrot.slane %v1350_v62, %v2704_v6  ;;  %1359 = vrot.lane.b32.xlu1 %v3160_v55, %s2538_s13  ;;  %1355 = vrot.lane.b32.xlu0 %v3160_v55, %s2536_s12  ;;  %v776_v46 = vmul.f32 %v2422_v52, %v3108_v26  ;;  %2423 = vrsqrt.f32 %v3168_v16  ;;  %v1645_v28 = vrot.slane %v1348_v61, %v2704_v6  ;;  %s2080_s12 = sshll.u32 %s2661_s29, 4  ;;  %s3465_s12 = int_to_ptr.vmem [resolvable:$true] %s2080_s12 }
0x1298   : > { %v3179_v31 = vadd.f32 %v1032_v35, %v1030_v17  ;;  %v1653_v43 = vrot.slane %v1333_v57, %v2704_v6  ;;  %v1761_v40 = vsel %vm1759_vm15, %v3056_v49, %v1641_v47  ;;  %v1677_v48 = vrot.slane %v1408_v8, %v2704_v6 }
0x1299   : > { %v1351_v33 = vcombine.high %v1347_v19, %v1347_v19  ;;  %v1657_v37 = vrot.slane %v1347_v19, %v2704_v6  ;;  %v778_v60 = vsel %vm777_vm1, %v3108_v26, %v776_v46  ;;  %v874_v25 = vsel %vm873_vm0, %v3106_v14, %v872_v27 }
0x129a   : > { %v1661_v61 = vrot.slane %v1349_v21, %v2704_v6  ;;  %v781_v49 = vsel %vm779_vm5, %v780_v3, %v778_v60  ;;  %v877_v8 = vsel %vm875_vm2, %v876_v23, %v874_v25  ;;  %2425 = vrsqrt.f32 %v3179_v31 }
0x129b   : > { %787 = vrot.lane.b32.xlu1 %v2830_v4, %s2542_s14  ;;  %783 = vrot.lane.b32.xlu0 %v781_v49, %s2543_s22  ;;  %v1770_v57 = vsel %vm1768_vm3, %v1761_v40, %v1681_v50  ;;  %v1760_v62 = vsel %vm1759_vm15, %v3062_v63, %v1637_v18  ;;  %v1432_v2 = vcombine.high %v3144_v0, %v3144_v0  ;;  %vm955_vm6 = vcmp.eq.f32.partialorder %v3168_v16, inf }
0x129c   : > { %v1763_v4 = vsel %vm1759_vm15, %v3065_v29, %v1649_v32  ;;  %1779 = vst.msk [vmem:[%s2661_s29 + $0x8] sm:$0xff] %vm1777_vm4, %v1770_v57  ;;  %v1769_v14 = vsel %vm1768_vm3, %v1760_v62, %v1677_v48  ;;  %v1685_v26 = vrot.slane %v1430_v42, %v2704_v6  ;;  %v1762_v23 = vsel %vm1759_vm15, %v3068_v34, %v1645_v28 }
0x129d   : > { %v1429_v3 = vrot.slane %v1401_v10, %v2812_v5  ;;  %1778 = vst.msk [vmem:[%s2661_s29] sm:$0xff] %vm1777_vm4, %v1769_v14  ;;  %v1689_v63 = vrot.slane %v1432_v2, %v2704_v6  ;;  %v1765_v0 = vsel %vm1759_vm15, %v3085_v59, %v1657_v37  ;;  %v1693_v29 = vrot.slane %v3166_v41, %v2704_v6 }
0x129e   : > { %v1764_v52 = vsel %vm1759_vm15, %v3094_v1, %v1653_v43  ;;  %v1771_v34 = vsel %vm1768_vm3, %v1762_v23, %v1685_v26  ;;  %v1665_v19 = vrot.slane %v1351_v33, %v2704_v6  ;;  %v1114_v59 = vpop.permute.xlu1 %1113  ;;  %v1766_v21 = vsel %vm1759_vm15, %v3102_v24, %v1661_v61  ;;  %v2439_v43 = vld [vmem:[%s2650_s20] sm:$0xff]  ;;  %s2546_s20 = smov 10  }
0x129f   : > { %883 = vrot.lane.b32.xlu1 %v2826_v13, %s2542_s14  ;;  %v1697_v10 = vrot.slane %v1429_v3, %v2704_v6  ;;  %v1433_v42 = vcombine.high %v1429_v3, %v1429_v3  ;;  %v1110_v47 = vpop.permute.xlu0 %1109  ;;  %879 = vrot.lane.b32.xlu0 %v877_v8, %s2543_s22  ;;  %v1772_v17 = vsel %vm1768_vm3, %v1763_v4, %v1689_v63  ;;  %vm957_vm7 = vcmp.eq.f32.partialorder %v3168_v16, 0.0 }
0x12a0   : > { %1780 = vst.msk [vmem:[%s2661_s29 + $0x10] sm:$0xff] %vm1777_vm4, %v1771_v34  ;;  %v1773_v1 = vsel %vm1768_vm3, %v1764_v52, %v1693_v29  ;;  %v1431_v13 = vcombine.high %v3166_v41, %v3166_v41  ;;  %v1112_v18 = vadd.f32 %v1110_v47, %v3009_v7  ;;  %1781 = vst.msk [vmem:[%s2661_s29 + $0x18] sm:$0xff] %vm1777_vm4, %v1772_v17  ;;  %vm1037_vm9 = vcmp.eq.f32.partialorder %v3179_v31, inf }
0x12a1   : > { %v1774_v32 = vsel %vm1768_vm3, %v1765_v0, %v1697_v10  ;;  %1782 = vst.msk [vmem:[%s2661_s29 + $0x20] sm:$0xff] %vm1777_vm4, %v1773_v1  ;;  %v1705_v35 = vrot.slane %v1433_v42, %v2704_v6  ;;  %v1767_v50 = vsel %vm1759_vm15, %v3099_v54, %v1665_v19  ;;  %v2424_v46 = vpop.eup %2423  ;;  %v958_v54 = vand.u32 2147483648, %v3168_v16 }
0x12a2   : > { %1783 = vst.msk [vmem:[%s2661_s29 + $0x28] sm:$0xff] %vm1777_vm4, %v1774_v32  ;;  %v1701_v24 = vrot.slane %v1431_v13, %v2704_v6  ;;  %v1116_v41 = vadd.f32 %v1114_v59, %v1112_v18  ;;  %v954_v7 = vmul.f32 %v2424_v46, %v3168_v16  ;;  %v1196_v37 = vpop.permute.xlu1 %1195  ;;  %vm1039_vm10 = vcmp.eq.f32.partialorder %v3179_v31, 0.0 }
0x12a3   : > { %794 = vrot.lane.b32.xlu1 %v2822_v11, %s2544_s23  ;;  %v1776_v27 = vsel %vm1768_vm3, %v1767_v50, %v1705_v35  ;;  %v1192_v28 = vpop.permute.xlu0 %1191  ;;  %790 = vrot.lane.b32.xlu0 %v2439_v43, %s2545_s30  ;;  %vm799_vm15 = vcmask 31744   ;;  %vm395_vm0 = vcmask 80896   ;;  %vm801_vm1 = vcmask 56320   ;;  %s2553_s30 = smov [#allocation6]  }
0x12a4   : > { %1785 = vst.msk [vmem:[%s2661_s29 + $0x38] sm:$0xff] %vm1777_vm4, %v1776_v27  ;;  %v1775_v40 = vsel %vm1768_vm3, %v1766_v21, %v1701_v24  ;;  %v2426_v48 = vpop.eup %2425  ;;  %v1194_v11 = vadd.f32 %v1192_v28, %v3019_v44  ;;  %v956_v33 = vsel %vm955_vm6, %v3168_v16, %v954_v7  ;;  %2427 = vrsqrt.f32 %v1116_v41 }
0x12a5   : > { %1784 = vst.msk [vmem:[%s2661_s29 + $0x30] sm:$0xff] %vm1777_vm4, %v1775_v40  ;;  %v959_v60 = vsel %vm957_vm7, %v958_v54, %v956_v33  ;;  %v1036_v61 = vmul.f32 %v2426_v48, %v3179_v31  ;;  %v1040_v16 = vand.u32 2147483648, %v3179_v31  ;;  %vm1119_vm8 = vcmp.eq.f32.partialorder %v1116_v41, inf }
0x12a6   : > { %v1198_v25 = vadd.f32 %v1196_v37, %v1194_v11  ;;  %vm1121_vm11 = vcmp.eq.f32.partialorder %v1116_v41, 0.0 }
0x12a7   : > { %961 = vrot.lane.b32.xlu1 %v959_v60, %s2543_s22  ;;  %887 = vrot.lane.b32.xlu0 %v2816_v9, %s2544_s23  ;;  %v1038_v44 = vsel %vm1037_vm9, %v3179_v31, %v1036_v61  ;;  %vm1815_vm9 = vcmask 162816  }
0x12a8   : > { %2429 = vrsqrt.f32 %v1198_v25  ;;  %v1041_v9 = vsel %vm1039_vm10, %v1040_v16, %v1038_v44  ;;  %vm1201_vm12 = vcmp.eq.f32.partialorder %v1198_v25, inf  ;;  %v1204_v2 = vand.u32 2147483648, %v1198_v25 }
0x12a9   : > { %vm1203_vm13 = vcmp.eq.f32.partialorder %v1198_v25, 0.0  ;;  %vm1817_vm10 = vcmask 244736  }
0x12ab   : > { %969 = vrot.lane.b32.xlu1 %v2867_v45, %s2544_s23  ;;  %965 = vrot.lane.b32.xlu0 %v2890_v56, %s2542_s14  ;;  %v1122_v45 = vand.u32 2147483648, %v1116_v41 }
0x12ae   : > { %v2428_v49 = vpop.eup %2427 }
0x12af   : > { %1047 = vrot.lane.b32.xlu1 %v2894_v58, %s2542_s14  ;;  %1043 = vrot.lane.b32.xlu0 %v1041_v9, %s2543_s22  ;;  %v1118_v8 = vmul.f32 %v2428_v49, %v1116_v41 }
0x12b1   : > { %v1120_v57 = vsel %vm1119_vm8, %v1116_v41, %v1118_v8  ;;  %vm1819_vm8 = vcmask 326656  }
0x12b2   : > { %v2430_v62 = vpop.eup %2429  ;;  %v1123_v56 = vsel %vm1121_vm11, %v1122_v45, %v1120_v57  ;;  %vm1821_vm11 = vcmask 408576  }
0x12b3   : > { %1051 = vrot.lane.b32.xlu0 %v2862_v38, %s2544_s23  ;;  %1125 = vrot.lane.b32.xlu1 %v1123_v56, %s2543_s22  ;;  %v1200_v31 = vmul.f32 %v2430_v62, %v1198_v25 }
0x12b5   : > { %v1202_v58 = vsel %vm1201_vm12, %v1198_v25, %v1200_v31  ;;  %vm1823_vm12 = vcmask 490496  }
0x12b6   : > { %v1205_v4 = vsel %vm1203_vm13, %v1204_v2, %v1202_v58  ;;  %vm1825_vm13 = vcmask 572416  }
0x12b7   : > { %1129 = vrot.lane.b32.xlu0 %v2988_v12, %s2542_s14  ;;  %1133 = vrot.lane.b32.xlu1 %v2920_v20, %s2544_s23 }
0x12bb   : > { %1211 = vrot.lane.b32.xlu1 %v2997_v51, %s2542_s14  ;;  %1207 = vrot.lane.b32.xlu0 %v1205_v4, %s2543_s22 }
0x12bf   : > { %1297 = vrot.lane.b32.xlu1 %v3118_v30, %s2544_s23  ;;  %1215 = vrot.lane.b32.xlu0 %v2910_v15, %s2544_s23 }
0x12c3   : > { %1293 = vrot.lane.b32.xlu0 %v3122_v22, %s2542_s14 }
0x1305   : > { %v1278_v38 = vpop.permute.xlu1 %1277  ;;  %v1274_v20 = vpop.permute.xlu0 %1273 }
0x1306   : > { %v1276_v12 = vadd.f32 %v1274_v20, %v3139_v53  ;;  %v3525_v53 = vmov 0.0  }
0x1307   : > { %396 = vst.msk [vmem:[#allocation4] sm:$0xff] %vm395_vm0, %v3525_v53  ;;  %397 = vst.msk [vmem:[#allocation5] sm:$0xff] %vm395_vm0, %v3525_v53 }
0x1308   : > { %v1280_v14 = vadd.f32 %v1278_v38, %v1276_v12 }
0x1309   : > { %v1360_v26 = vpop.permute.xlu1 %1359  ;;  %v1356_v23 = vpop.permute.xlu0 %1355 }
0x130a   : > { %v1358_v51 = vadd.f32 %v1356_v23, %v3160_v55  ;;  %2431 = vrsqrt.f32 %v1280_v14  ;;  %vm1283_vm2 = vcmp.eq.f32.partialorder %v1280_v14, inf  ;;  %v1286_v10 = vand.u32 2147483648, %v1280_v14 }
0x130b   : > { %vm1285_vm3 = vcmp.eq.f32.partialorder %v1280_v14, 0.0 }
0x130c   : > { %v1362_v3 = vadd.f32 %v1360_v26, %v1358_v51 }
0x130d   : > { %v788_v63 = vpop.permute.xlu1 %787  ;;  %v784_v30 = vpop.permute.xlu0 %783 }
0x130e   : > { %v798_v0 = vsel %vm797_vm14, %v784_v30, %v788_v63  ;;  %2433 = vrsqrt.f32 %v1362_v3  ;;  %vm1365_vm4 = vcmp.eq.f32.partialorder %v1362_v3, inf  ;;  %v1368_v35 = vand.u32 2147483648, %v1362_v3 }
0x130f   : > { %vm1367_vm5 = vcmp.eq.f32.partialorder %v1362_v3, 0.0 }
0x1311   : > { %v884_v15 = vpop.permute.xlu1 %883  ;;  %v880_v29 = vpop.permute.xlu0 %879 }
0x1312   : > { %v890_v17 = vsel %vm797_vm14, %v880_v29, %v884_v15 }
0x1314   : > { %v2432_v22 = vpop.eup %2431 }
0x1315   : > { %v795_v52 = vpop.permute.xlu1 %794  ;;  %v3309_v55 = vpop.permute.xlu0 %790  ;;  %v1282_v34 = vmul.f32 %v2432_v22, %v1280_v14 }
0x1316   : > { %v800_v42 = vsel %vm799_vm15, %v798_v0, %v3309_v55  ;;  %v891_v32 = vsel %vm799_vm15, %v890_v17, %v3309_v55 }
0x1317   : > { %v1284_v19 = vsel %vm1283_vm2, %v1280_v14, %v1282_v34  ;;  %v3314_v59 = vsel %vm801_vm1, %v800_v42, %v795_v52 }
0x1318   : > { %v2434_v47 = vpop.eup %2433  ;;  %v1287_v13 = vsel %vm1285_vm3, %v1286_v10, %v1284_v19  ;;  %v1829_v43 = vmul.f32 %v3314_v59, %v3314_v59 }
0x1319   : > { %v962_v1 = vpop.permute.xlu1 %961  ;;  %1289 = vrot.lane.b32.xlu1 %v1287_v13, %s2543_s22  ;;  %v888_v21 = vpop.permute.xlu0 %887  ;;  %v1364_v18 = vmul.f32 %v2434_v47, %v1362_v3 }
0x131a   : > { %v892_v50 = vsel %vm801_vm1, %v891_v32, %v888_v21  ;;  %v1851_v21 = vld [vmem:[#allocation4] sm:$0xff] }
0x131b   : > { %v1366_v46 = vsel %vm1365_vm4, %v1362_v3, %v1364_v18  ;;  %v1831_v27 = vmul.f32 %v892_v50, %v892_v50  ;;  %v1830_v54 = vadd.f32 %v892_v50, %v3314_v59 }
0x131c   : > { %v1369_v41 = vsel %vm1367_vm5, %v1368_v35, %v1366_v46 }
0x131d   : > { %v970_v24 = vpop.permute.xlu1 %969  ;;  %1375 = vrot.lane.b32.xlu1 %v3130_v36, %s2542_s14  ;;  %1371 = vrot.lane.b32.xlu0 %v1369_v41, %s2543_s22  ;;  %v966_v7 = vpop.permute.xlu0 %965  ;;  %v1832_v33 = vadd.f32 %v1831_v27, %v1829_v43  ;;  %s3463_s14 = scalar_lea.hbm %s3518_s4, %s2248_s11  ;;  %s3473_s22 = scalar_lea.sflag [#allocation7], %s3526_s19 }
0x131e   : > { %v972_v28 = vsel %vm797_vm14, %v962_v1, %v966_v7 }
0x131f   : > { %v973_v40 = vsel %vm799_vm15, %v972_v28, %v3309_v55 }
0x1320   : > { %v974_v11 = vsel %vm801_vm1, %v973_v40, %v970_v24 }
0x1321   : > { %v1048_v48 = vpop.permute.xlu1 %1047  ;;  %1379 = vrot.lane.b32.xlu0 %v3112_v39, %s2544_s23  ;;  %v1044_v36 = vpop.permute.xlu0 %1043  ;;  %v1833_v37 = vadd.f32 %v1830_v54, %v974_v11  ;;  %v1834_v60 = vmul.f32 %v974_v11, %v974_v11  ;;  %s2440_s23 = scalar_lea.vmem %s3465_s12, 1024 }
0x1322   : > { %v1054_v25 = vsel %vm797_vm14, %v1044_v36, %v1048_v48  ;;  %p2441_p12 = scmp.ne.s32.totalorder %s3465_s12, %s2440_s23 }
0x1323   : > { %v1835_v61 = vadd.f32 %v1834_v60, %v1832_v33  ;;  %v1055_v49 = vsel %vm799_vm15, %v1054_v25, %v3309_v55 }
0x1324   : > { %p2442_p13 = pnand %p2441_p12, %p2619_p5 }
0x1325   : > { %v1126_v44 = vpop.permute.xlu1 %1125  ;;  %1787 = vrot.lane.b32.xlu0 %v892_v50, %s2546_s20  ;;  %v1052_v16 = vpop.permute.xlu0 %1051  ;;  %v1854_v50 = vld [vmem:[#allocation5] sm:$0xff] }
0x1326   : > { %v1056_v9 = vsel %vm801_vm1, %v1055_v49, %v1052_v16  ;;  %p2443_p0 = pneg %p2442_p13 }
0x1327   : > { %v1836_v8 = vadd.f32 %v1833_v37, %v1056_v9  ;;  %v1837_v45 = vmul.f32 %v1056_v9, %v1056_v9 }
0x1329   : > { %v1134_v39 = vpop.permute.xlu1 %1133  ;;  %1791 = vrot.lane.b32.xlu0 %v974_v11, %s2547_s5  ;;  %v1130_v57 = vpop.permute.xlu0 %1129  ;;  %v1838_v62 = vadd.f32 %v1837_v45, %v1835_v61  ;;  %v1857_v11 = vld [vmem:[#allocation2] sm:$0xff] }
0x132a   : > { %v1136_v56 = vsel %vm797_vm14, %v1126_v44, %v1130_v57  ;;  %v1866_v60 = vrot.slane %v1857_v11, %v2812_v5  ;;  %v1859_v44 = vcombine.high %v1857_v11, %v1857_v11 }
0x132b   : > { %v1137_v31 = vsel %vm799_vm15, %v1136_v56, %v3309_v55 }
0x132c   : > { %v1138_v58 = vsel %vm801_vm1, %v1137_v31, %v1134_v39  ;;  %v1882_v61 = vrot.slane %v1866_v60, %v2812_v5 }
0x132d   : > { %v1212_v2 = vpop.permute.xlu1 %1211  ;;  %1795 = vrot.lane.b32.xlu0 %v1056_v9, %s2548_s28  ;;  %v1208_v4 = vpop.permute.xlu0 %1207  ;;  %v1839_v38 = vadd.f32 %v1836_v8, %v1138_v58  ;;  %v1840_v20 = vmul.f32 %v1138_v58, %v1138_v58  ;;  %v1873_v9 = vrot.slane %v1859_v44, %v2812_v5 }
0x132e   : > { %v1218_v12 = vsel %vm797_vm14, %v1208_v4, %v1212_v2  ;;  %v1911_v16 = vrot.slane %v1882_v61, %v2704_v6  ;;  %v1904_v49 = vcombine.high %v1882_v61, %v1882_v61 }
0x132f   : > { %v1841_v14 = vadd.f32 %v1840_v20, %v1838_v62  ;;  %v1219_v23 = vsel %vm799_vm15, %v1218_v12, %v3309_v55  ;;  %v1889_v45 = vrot.slane %v1873_v9, %v2812_v5  ;;  %v1874_v62 = vcombine.high %v1866_v60, %v1866_v60 }
0x1330   : > { %v1919_v8 = vrot.slane %v1904_v49, %v2704_v6  ;;  %v1875_v4 = vcombine.high %v1873_v9, %v1873_v9 }
0x1331   : > { %1799 = vrot.lane.b32.xlu0 %v1138_v58, %s2549_s6  ;;  %v1216_v26 = vpop.permute.xlu0 %1215  ;;  %v1298_v0 = vpop.permute.xlu1 %1297  ;;  %v1927_v39 = vrot.slane %v1889_v45, %v2704_v6  ;;  %v1905_v57 = vcombine.high %v1889_v45, %v1889_v45  ;;  %v1896_v31 = vrot.slane %v1874_v62, %v2812_v5 }
0x1332   : > { %v1220_v51 = vsel %vm801_vm1, %v1219_v23, %v1216_v26  ;;  %v1903_v20 = vrot.slane %v1875_v4, %v2812_v5 }
0x1333   : > { %v1842_v3 = vadd.f32 %v1839_v38, %v1220_v51  ;;  %v1843_v63 = vmul.f32 %v1220_v51, %v1220_v51  ;;  %v1935_v56 = vrot.slane %v1905_v57, %v2704_v6  ;;  %v1915_v58 = vrot.slane %v1896_v31, %v2704_v6 }
0x1334   : > { %v1906_v2 = vcombine.high %v1896_v31, %v1896_v31  ;;  %v1931_v12 = vrot.slane %v1903_v20, %v2704_v6 }
0x1335   : > { %1803 = vrot.lane.b32.xlu0 %v1220_v51, %s2550_s7  ;;  %v1844_v30 = vadd.f32 %v1843_v63, %v1841_v14  ;;  %v1294_v15 = vpop.permute.xlu0 %1293  ;;  %v1907_v14 = vcombine.high %v1903_v20, %v1903_v20 }
0x1336   : > { %v1923_v38 = vrot.slane %v1906_v2, %v2704_v6 }
0x1337   : > { %v1939_v26 = vrot.slane %v1907_v14, %v2704_v6 }
0x138b   : > { %v1290_v29 = vpop.permute.xlu1 %1289 }
0x138c   : > { %v1300_v22 = vsel %vm797_vm14, %v1290_v29, %v1294_v15 }
0x138d   : > { %v1301_v52 = vsel %vm799_vm15, %v1300_v22, %v3309_v55 }
0x138e   : > { %v1302_v53 = vsel %vm801_vm1, %v1301_v52, %v1298_v0 }
0x138f   : > { %v1376_v34 = vpop.permute.xlu1 %1375  ;;  %1807 = vrot.lane.b32.xlu1 %v1302_v53, %s2551_s9  ;;  %v1372_v10 = vpop.permute.xlu0 %1371  ;;  %v1846_v19 = vmul.f32 %v1302_v53, %v1302_v53  ;;  %v1845_v47 = vadd.f32 %v1842_v3, %v1302_v53 }
0x1390   : > { %v1382_v42 = vsel %vm797_vm14, %v1372_v10, %v1376_v34  ;;  %vm1827_vm14 = vcmask 654336  }
0x1391   : > { %v1383_v1 = vsel %vm799_vm15, %v1382_v42, %v3309_v55  ;;  %v1847_v18 = vadd.f32 %v1846_v19, %v1844_v30  ;;  %vm1964_vm15 = vcmask 261248  }
0x1393   : > { %v1380_v17 = vpop.permute.xlu0 %1379 }
0x1394   : > { %v1384_v13 = vsel %vm801_vm1, %v1383_v1, %v1380_v17 }
0x1395   : > { %1811 = vrot.lane.b32.xlu0 %v1384_v13, %s2552_s10  ;;  %v1848_v32 = vadd.f32 %v1845_v47, %v1384_v13  ;;  %v1849_v35 = vmul.f32 %v1384_v13, %v1384_v13 }
0x1397   : > { %v1850_v46 = vadd.f32 %v1849_v35, %v1847_v18  ;;  %v1852_v24 = vadd.f32 %v1851_v21, %v1848_v32  ;;  %v1788_v23 = vpop.permute.xlu0 %1787 }
0x1398   : > { %v1814_v5 = vsel %vm395_vm0, %v3314_v59, %v1788_v23 }
0x1399   : > { %1853 = vst.msk [vmem:[#allocation4] sm:$0xff] %vm395_vm0, %v1852_v24  ;;  %v1855_v41 = vadd.f32 %v1854_v50, %v1850_v46 }
0x139b   : > { %1856 = vst.msk [vmem:[#allocation5] sm:$0xff] %vm395_vm0, %v1855_v41  ;;  %v1792_v51 = vpop.permute.xlu0 %1791 }
0x139c   : > { %v1816_v30 = vsel %vm1815_vm9, %v1814_v5, %v1792_v51 }
0x139f   : > { %v1796_v3 = vpop.permute.xlu0 %1795 }
0x13a0   : > { %v1973_v7 = vld [vmem:[#allocation4] sm:$0xff]  ;;  %v1818_v15 = vsel %vm1817_vm10, %v1816_v30, %v1796_v3 }
0x13a1   : > { %v3362_v27 = vmul.f32 0.125, %v1973_v7 }
0x13a2   : > { %v1975_v28 = vld [vmem:[#allocation5] sm:$0xff] }
0x13a3   : > { %1992 = vrot.lane.b32.xlu0 %v3362_v27, %s2547_s5  ;;  %1989 = vrot.lane.b32.xlu1 %v3362_v27, %s2546_s20  ;;  %v1976_v55 = vmul.f32 %v3362_v27, %v1973_v7  ;;  %v1800_v63 = vpop.permute.xlu0 %1799 }
0x13a4   : > { %v1820_v29 = vsel %vm1819_vm8, %v1818_v15, %v1800_v63 }
0x13a5   : > { %v1977_v43 = vsub.f32 %v1975_v28, %v1976_v55 }
0x13a7   : > { %1998 = vrot.lane.b32.xlu0 %v3362_v27, %s2549_s6  ;;  %1995 = vrot.lane.b32.xlu1 %v3362_v27, %s2548_s28  ;;  %v1978_v54 = vmax.f32 %v1977_v43, 0.0  ;;  %v1804_v0 = vpop.permute.xlu0 %1803 }
0x13a8   : > { %v1822_v22 = vsel %vm1821_vm11, %v1820_v29, %v1804_v0 }
0x13a9   : > { %v1980_v40 = vmul.f32 0.14285715, %v1978_v54 }
0x13ab   : > { %2001 = vrot.lane.b32.xlu1 %v3362_v27, %s2550_s7  ;;  %2435 = vrsqrt.f32 %v1980_v40  ;;  %vm1983_vm6 = vcmp.eq.f32.partialorder %v1980_v40, inf  ;;  %v1986_v33 = vand.u32 2147483648, %v1980_v40  ;;  %vm1985_vm7 = vcmp.eq.f32.partialorder %v1980_v40, 0.0 }
0x13b5   : > { %v2436_v48 = vpop.eup %2435 }
0x13b6   : > { %v1982_v36 = vmul.f32 %v2436_v48, %v1980_v40 }
0x13b8   : > { %v1984_v37 = vsel %vm1983_vm6, %v1980_v40, %v1982_v36 }
0x13b9   : > { %v3376_v25 = vsel %vm1985_vm7, %v1986_v33, %v1984_v37 }
0x13ba   : > { %2021 = vrot.lane.b32.xlu0 %v3376_v25, %s2547_s5  ;;  %2018 = vrot.lane.b32.xlu1 %v3376_v25, %s2546_s20  ;;  %s2444_s20 = sshll.u32 %s2553_s30, 4  ;;  %s2445_s20 = int_to_ptr.vmem [resolvable:$false] %s2444_s20 }
0x13bb   : > { %s2446_s5 = scalar_lea.vmem %s2445_s20, 2048  ;;  %p2447_p1 = scmp.lt.s32.totalorder %s3465_s12, %s2445_s20 }
0x13bc   : > { %p2448_p2 = scmp.lt.s32.totalorder %s2446_s5, %s2440_s23 }
0x13be   : > { %2004 = vrot.lane.b32.xlu0 %v3362_v27, %s2551_s9  ;;  %2007 = vrot.lane.b32.xlu1 %v3362_v27, %s2552_s10  ;;  %p2449_p3 = por %p2448_p2, %p2447_p1 }
0x13c0   : > { %p2450_p4 = pnand %p2449_p3, %p2443_p0 }
0x13c2   : > { %2024 = vrot.lane.b32.xlu1 %v3376_v25, %s2548_s28  ;;  %1940 = vrot.lane.b32.xlu0 %v1911_v16, %s2540_s8 }
0x13c6   : > { %2027 = vrot.lane.b32.xlu1 %v3376_v25, %s2549_s6  ;;  %1944 = vrot.lane.b32.xlu0 %v1919_v8, %s2540_s8 }
0x13ca   : > { %2030 = vrot.lane.b32.xlu1 %v3376_v25, %s2550_s7  ;;  %1948 = vrot.lane.b32.xlu0 %v1927_v39, %s2540_s8 }
0x13ce   : > { %2033 = vrot.lane.b32.xlu1 %v3376_v25, %s2551_s9  ;;  %1952 = vrot.lane.b32.xlu0 %v1935_v56, %s2540_s8 }
0x13d2   : > { %2036 = vrot.lane.b32.xlu1 %v3376_v25, %s2552_s10 }
0x13d6   : > { %1942 = vrot.lane.b32.xlu1 %v1915_v58, %s2540_s8 }
0x13da   : > { %1946 = vrot.lane.b32.xlu1 %v1923_v38, %s2540_s8 }
0x13de   : > { %1950 = vrot.lane.b32.xlu1 %v1931_v12, %s2540_s8 }
0x13e2   : > { %1954 = vrot.lane.b32.xlu1 %v1939_v26, %s2540_s8 }
0x1401   : > { %v1808_v6 = vpop.permute.xlu1 %1807 }
0x1402   : > { %v1824_v52 = vsel %vm1823_vm12, %v1822_v22, %v1808_v6 }
0x1407   : > { %v1812_v53 = vpop.permute.xlu0 %1811 }
0x1408   : > { %v1826_v59 = vsel %vm1825_vm13, %v1824_v52, %v1812_v53 }
0x1409   : > { %1828 = vst.msk [vmem:[%s2655_s27] sm:$0xff] %vm1827_vm14, %v1826_v59 }
0x1410   : > { %v2046_v8 = vld [vmem:[%s2655_s27] sm:$0xff] }
0x1415   : > { %v1990_v34 = vpop.permute.xlu1 %1989  ;;  %v1993_v10 = vpop.permute.xlu0 %1992 }
0x1416   : > { %v2010_v19 = vsel %vm395_vm0, %v3362_v27, %v1990_v34 }
0x1417   : > { %v2011_v1 = vsel %vm1815_vm9, %v2010_v19, %v1993_v10 }
0x1419   : > { %v1996_v42 = vpop.permute.xlu1 %1995  ;;  %v1999_v47 = vpop.permute.xlu0 %1998 }
0x141a   : > { %v2012_v13 = vsel %vm1817_vm10, %v2011_v1, %v1996_v42 }
0x141b   : > { %v2013_v32 = vsel %vm1819_vm8, %v2012_v13, %v1999_v47 }
0x141d   : > { %v2002_v17 = vpop.permute.xlu1 %2001 }
0x141e   : > { %v2014_v35 = vsel %vm1821_vm11, %v2013_v32, %v2002_v17 }
0x142c   : > { %v2019_v21 = vpop.permute.xlu1 %2018  ;;  %v2022_v18 = vpop.permute.xlu0 %2021 }
0x142d   : > { %v2039_v40 = vsel %vm395_vm0, %v3376_v25, %v2019_v21 }
0x142e   : > { %v2040_v48 = vsel %vm1815_vm9, %v2039_v40, %v2022_v18 }
0x1430   : > { %v2008_v50 = vpop.permute.xlu1 %2007  ;;  %v2005_v46 = vpop.permute.xlu0 %2004 }
0x1431   : > { %v2015_v24 = vsel %vm1823_vm12, %v2014_v35, %v2005_v46 }
0x1432   : > { %v2016_v41 = vsel %vm1825_vm13, %v2015_v24, %v2008_v50 }
0x1433   : > { %v2047_v39 = vsub.f32 %v2046_v8, %v2016_v41 }
0x1434   : > { %v2025_v7 = vpop.permute.xlu1 %2024  ;;  %v1941_v27 = vpop.permute.xlu0 %1940 }
0x1435   : > { %1965 = vst.msk [vmem:[%s2661_s29] sm:$0xff] %vm1964_vm15, %v1941_v27  ;;  %v2041_v33 = vsel %vm1817_vm10, %v2040_v48, %v2025_v7 }
0x1438   : > { %v2028_v55 = vpop.permute.xlu1 %2027  ;;  %v1945_v28 = vpop.permute.xlu0 %1944 }
0x1439   : > { %1967 = vst.msk [vmem:[%s2661_s29 + $0x10] sm:$0xff] %vm1964_vm15, %v1945_v28  ;;  %v2042_v37 = vsel %vm1819_vm8, %v2041_v33, %v2028_v55 }
0x143c   : > { %v2031_v43 = vpop.permute.xlu1 %2030  ;;  %v1949_v54 = vpop.permute.xlu0 %1948 }
0x143d   : > { %1969 = vst.msk [vmem:[%s2661_s29 + $0x20] sm:$0xff] %vm1964_vm15, %v1949_v54  ;;  %v2043_v60 = vsel %vm1821_vm11, %v2042_v37, %v2031_v43 }
0x1440   : > { %v2034_v11 = vpop.permute.xlu1 %2033  ;;  %v1953_v36 = vpop.permute.xlu0 %1952 }
0x1441   : > { %1971 = vst.msk [vmem:[%s2661_s29 + $0x30] sm:$0xff] %vm1964_vm15, %v1953_v36  ;;  %v2044_v25 = vsel %vm1823_vm12, %v2043_v60, %v2034_v11 }
0x1444   : > { %v2037_v61 = vpop.permute.xlu1 %2036 }
0x1445   : > { %v2045_v44 = vsel %vm1825_vm13, %v2044_v25, %v2037_v61 }
0x1446   : > { %v2048_v16 = vadd.f32 1e-08, %v2045_v44 }
0x1448   : > { %2437 = vrcp.f32 %v2048_v16  ;;  %v1943_v49 = vpop.permute.xlu1 %1942 }
0x1449   : > { %1966 = vst.msk [vmem:[%s2661_s29 + $0x8] sm:$0xff] %vm1964_vm15, %v1943_v49 }
0x144c   : > { %v1947_v9 = vpop.permute.xlu1 %1946 }
0x144d   : > { %1968 = vst.msk [vmem:[%s2661_s29 + $0x18] sm:$0xff] %vm1964_vm15, %v1947_v9 }
0x1450   : > { %v1951_v45 = vpop.permute.xlu1 %1950 }
0x1451   : > { %1970 = vst.msk [vmem:[%s2661_s29 + $0x28] sm:$0xff] %vm1964_vm15, %v1951_v45 }
0x1452   : > { %v2438_v57 = vpop.eup %2437 }
0x1453   : > { %v2050_v62 = vmul.f32 %v2438_v57, %v2047_v39 }
0x1454   : > { %v1955_v56 = vpop.permute.xlu1 %1954 }
0x1455   : > { %2051 = vst.msk [vmem:[%s2655_s27] sm:$0xff] %vm1827_vm14, %v2050_v62 }
0x1456   : > { %1972 = vst.msk [vmem:[%s2661_s29 + $0x38] sm:$0xff] %vm1964_vm15, %v1955_v56 }
0x1457   : > { %2453 = shalt.err (!%p2450_p4)
}
0x1458   : > { %s2454_s27 = scalar_lea.hbm %s3463_s14, 1024  ;;  %s2458_s6 = scalar_lea.hbm %s3518_s4, 2048 }
0x1459   : > { %p2455_p7 = scmp.ne.s32.totalorder %s3463_s14, %s2454_s27  ;;  %p2459_p10 = scmp.lt.u32.totalorder %s3463_s14, %s3518_s4 }
0x145a   : > { %p2460_p11 = scmp.lt.u32.totalorder %s2458_s6, %s2454_s27  ;;  %p2462_p13 = scmp.lt.u32.totalorder %s2454_s27, %s3463_s14 }
0x145b   : > { %p2456_p8 = pnand %p2455_p7, %p2619_p5 }
0x145c   : > { %p2461_p12 = por %p2460_p11, %p2459_p10 }
0x145d   : > { %p2457_p9 = pneg %p2456_p8 }
0x145e   : > { %p2463_p0 = por %p2462_p13, %p2461_p12 }
0x1460   : > { %p2464_p1 = pnand %p2463_p0, %p2457_p9 }
0x1462   : > { %2467 = shalt.err (!%p2464_p1)
}
0x1463   : > { %s2554_s10 = smov 128   ;;  %s2555_s11 = smov 8  }
0x1464   : > { %2319 = dma.vmem_to_hbm [thread:$0]  (%p2619_p5), %s3465_s12, 1024, %s3463_s14, %s3473_s22, %s2554_s10, %s2554_s10, %s2555_s11  }
0x1465 PF: > { %p2325_p2 = scmp.ge.s32.totalorder %s2514_s18, 2  ;;  %s2109_s13 = sand.u32 1, %s2502_s15  }
0x1466   : > { %s2110_s8 = scalar_lea.sflag [#allocation7], %s2109_s13 }
0x1467   : > { %p2322_p3 = pnand %p2325_p2, %p2623_p6 }
0x1469   : > { %2497 = dma.done.wait (!%p2322_p3), %s2110_s8, 1024  }
0x146a   : > { %2499 = vsyncadd (!%p2322_p3), %s2110_s8, 4294966272  ;;  %p15_p4 = scmp.ge.s32.totalorder %s2606_s21, 4   ;;  %s3527_s15 = smov %s2506_s16 }
0x146b   : > { %s3528_s16 = smov %s2510_s17  ;;  %s3529_s17 = smov %s2617_s24 }
0x146c   : > { %s3530_s18 = smov %s2606_s21  ;;  %17 = sbr.rel (!%p15_p4) target bundleno = 3 (0x3), region = 111 }
0x1473   :  { %2115 = vsyncpa [#allocation7], 1 }
0x1474   :  { %2117 = vsyncpa [#allocation7 + $0x1], 1 }

</bundles_post_ra>
